<compile_context>
chip_gen: v7x
topology: tpu7x:2x2x1
jax: 0.10.0
libtpu: 0.0.40
codegen_flags: <defaults>
</compile_context>

<pallas_src>
import numpy as np

import jax
import jax.numpy as jnp
from jax.experimental import pallas as pl
from jax.experimental.pallas import tpu as pltpu

# ----------------------------- configuration -------------------------------
OBS_SHAPE = (4, 16, 16)     # (C, H, W)
ACTION_DIM = 4
HIDDEN_DIM = 32
FEATURE_DIM = 32            # encoder_feature_dim
NUM_LAYERS = 2              # encoder conv layers
NUM_FILTERS = 8
LOG_STD_MIN = -10.0
LOG_STD_MAX = 2.0
LN_EPS = 1e-5
BATCH = 2
LANE = 128                  # TPU vreg lane width


def _round_up(n, m):
    return (n + m - 1) // m * m


# Derived static sizes (encoder geometry and lane-padded GEMM widths).
C_IN, H_IN, W_IN = OBS_SHAPE
OH1 = (H_IN - 3) // 2 + 1          # 7
OW1 = (W_IN - 3) // 2 + 1          # 7
OH2, OW2 = OH1 - 2, OW1 - 2        # 5, 5
IN_FLAT = C_IN * H_IN * W_IN       # 1024
N1 = NUM_FILTERS * OH1 * OW1       # 392   conv1 flat output
N2 = NUM_FILTERS * OH2 * OW2       # 200   conv2 flat output (= encoder flat dim)
N1P = _round_up(N1, LANE)          # 512   lane-padded conv1 width
N2P = _round_up(N2, LANE)          # 256   lane-padded conv2 width

# Row layout of the coalesced small-matrix slab ("mats", f32, 32 lanes wide).
MATS_FCW = 0                        # fc_w.T  rows [0, N2P)
MATS_W1 = N2P                       # w1.T    rows [N2P, N2P+32)
MATS_W2 = N2P + HIDDEN_DIM          # w2.T
MATS_W3 = N2P + 2 * HIDDEN_DIM      # w3.T
MATS_ROWS = N2P + 3 * HIDDEN_DIM    # 352
MATS_COLS = max(FEATURE_DIM, HIDDEN_DIM)   # 32

# Row layout of the coalesced bias/vector slab ("bvec", f32, N1P lanes wide).
BV_C1B, BV_C2B, BV_FCB, BV_LNG, BV_LNB, BV_B1, BV_B2, BV_B3 = range(8)
BVEC_ROWS = 8

VMEM_SPEC = pl.BlockSpec(memory_space=pltpu.MemorySpace.VMEM)


# ------------------------- deterministic weight init ------------------------
def _orthogonal(rng, rows, cols, gain=1.0):
    """Mimics nn.init.orthogonal_ on a (rows, cols) matrix (deterministic)."""
    a = rng.standard_normal((rows, cols))
    if rows < cols:
        a = a.T
    q, r = np.linalg.qr(a)
    d = np.sign(np.diag(r))
    d = np.where(d == 0, 1.0, d)
    q = q * d
    if rows < cols:
        q = q.T
    return (gain * q).astype(np.float32)


def _conv_as_dense(w, h, wdt, stride, scale=1.0):
    """Exact dense (Toeplitz) GEMM matrix for a VALID NCHW/OIHW convolution.

    Row index = NCHW flatten of the input (c*H*W + y*W + x); column index =
    NCHW flatten of the output (f*OH*OW + oh*OW + ow), so the PyTorch
    `.view(B, -1)` ordering is preserved end to end.
    """
    fo, ci, kh, kw = w.shape
    oh_n = (h - kh) // stride + 1
    ow_n = (wdt - kw) // stride + 1
    dense = np.zeros((ci * h * wdt, fo * oh_n * ow_n), np.float32)
    for f in range(fo):
        for c in range(ci):
            for i in range(kh):
                for j in range(kw):
                    v = float(w[f, c, i, j]) * scale
                    if v == 0.0:
                        continue
                    for oh in range(oh_n):
                        for ow in range(ow_n):
                            row = c * h * wdt + (oh * stride + i) * wdt + (ow * stride + j)
                            col = f * oh_n * ow_n + oh * ow_n + ow
                            dense[row, col] = v
    return dense, oh_n, ow_n


def _pad2(a, rows, cols):
    out = np.zeros((rows, cols), np.float32)
    out[: a.shape[0], : a.shape[1]] = a
    return out


def make_params():
    """Returns (kernel_params, raw_params).

    kernel_params: conv-as-dense bf16 GEMM matrices + two coalesced f32 slabs
    (all layout work done once, host-side).  raw_params: the original
    PyTorch-style f32 weights used by the pure-JAX reference.
    """
    rng = np.random.default_rng(0)
    gain_relu = float(np.sqrt(2.0))

    # conv weights: zeros everywhere, orthogonal*gain at the kernel center
    conv1_w = np.zeros((NUM_FILTERS, C_IN, 3, 3), np.float32)
    conv1_w[:, :, 1, 1] = _orthogonal(rng, NUM_FILTERS, C_IN, gain_relu)
    conv1_b = np.zeros((NUM_FILTERS,), np.float32)
    conv2_w = np.zeros((NUM_FILTERS, NUM_FILTERS, 3, 3), np.float32)
    conv2_w[:, :, 1, 1] = _orthogonal(rng, NUM_FILTERS, NUM_FILTERS, gain_relu)
    conv2_b = np.zeros((NUM_FILTERS,), np.float32)

    fc_w = _orthogonal(rng, FEATURE_DIM, N2)
    fc_b = np.zeros((FEATURE_DIM,), np.float32)
    ln_g = np.ones((FEATURE_DIM,), np.float32)
    ln_b = np.zeros((FEATURE_DIM,), np.float32)
    w1 = _orthogonal(rng, HIDDEN_DIM, FEATURE_DIM)
    b1 = np.zeros((HIDDEN_DIM,), np.float32)
    w2 = _orthogonal(rng, HIDDEN_DIM, HIDDEN_DIM)
    b2 = np.zeros((HIDDEN_DIM,), np.float32)
    w3 = _orthogonal(rng, 2 * ACTION_DIM, HIDDEN_DIM)
    b3 = np.zeros((2 * ACTION_DIM,), np.float32)

    raw = dict(conv1_w=conv1_w, conv1_b=conv1_b, conv2_w=conv2_w, conv2_b=conv2_b,
               fc_w=fc_w, fc_b=fc_b, ln_g=ln_g, ln_b=ln_b,
               w1=w1, b1=b1, w2=w2, b2=b2, w3=w3, b3=b3)

    # ---- big weights: convs as dense GEMMs, 1/255 folded into conv1, bf16 ----
    c1_dense, _, _ = _conv_as_dense(conv1_w, H_IN, W_IN, stride=2, scale=1.0 / 255.0)
    c2_dense, _, _ = _conv_as_dense(conv2_w, OH1, OW1, stride=1)
    c1w = _pad2(c1_dense, IN_FLAT, N1P)          # (1024, 512)
    c2w = _pad2(c2_dense, N1P, N2P)              # (512, 256)

    # ---- coalesced bias/vector slab (one row per small vector) ----
    bvec = np.zeros((BVEC_ROWS, N1P), np.float32)
    bvec[BV_C1B, :N1] = np.repeat(conv1_b, OH1 * OW1)
    bvec[BV_C2B, :N2] = np.repeat(conv2_b, OH2 * OW2)
    bvec[BV_FCB, :FEATURE_DIM] = fc_b
    bvec[BV_LNG, :FEATURE_DIM] = ln_g
    bvec[BV_LNB, :FEATURE_DIM] = ln_b
    bvec[BV_B1, :HIDDEN_DIM] = b1
    bvec[BV_B2, :HIDDEN_DIM] = b2
    bvec[BV_B3, :2 * ACTION_DIM] = b3

    # ---- coalesced small-matrix slab (fc + trunk weights, pre-transposed) ----
    mats = np.zeros((MATS_ROWS, MATS_COLS), np.float32)
    mats[MATS_FCW:MATS_FCW + N2, :FEATURE_DIM] = fc_w.T
    mats[MATS_W1:MATS_W1 + HIDDEN_DIM, :HIDDEN_DIM] = w1.T
    mats[MATS_W2:MATS_W2 + HIDDEN_DIM, :HIDDEN_DIM] = w2.T
    mats[MATS_W3:MATS_W3 + HIDDEN_DIM, :2 * ACTION_DIM] = w3.T

    # Padding-hygiene guards: padded lanes/rows MUST stay exactly zero so that
    # ReLU(0)=0 keeps padded conv outputs zero and nothing leaks into conv2 or
    # the LayerNorm statistics (see perf-review correctness concern).
    assert not c1w[:, N1:].any() and not bvec[BV_C1B, N1:].any()
    assert not c2w[N1:, :].any() and not c2w[:, N2:].any() and not bvec[BV_C2B, N2:].any()
    assert not mats[N2:N2P, :].any()

    kern = dict(
        c1w=jnp.asarray(c1w, dtype=jnp.bfloat16),   # 1 MB  (was 2 MB f32)
        c2w=jnp.asarray(c2w, dtype=jnp.bfloat16),   # 256 KB (was 512 KB f32)
        bvec=jnp.asarray(bvec),                     # 16 KB
        mats=jnp.asarray(mats),                     # 45 KB
    )
    raw = {k: jnp.asarray(v) for k, v in raw.items()}
    return kern, raw


# ------------------------------ fused Pallas kernel --------------------------
def _actor_fused_kernel(x_ref, noise_ref, c1w_ref, c2w_ref, bvec_ref, mats_ref, o_ref):
    f32 = jnp.float32
    bf16 = jnp.bfloat16

    # --- carve up the coalesced parameter slabs (static slices, free) ---
    c1b = bvec_ref[BV_C1B:BV_C1B + 1, :]                      # (1, N1P)
    c2b = bvec_ref[BV_C2B:BV_C2B + 1, 0:N2P]                  # (1, N2P)
    fcb = bvec_ref[BV_FCB:BV_FCB + 1, 0:FEATURE_DIM]
    ln_g = bvec_ref[BV_LNG:BV_LNG + 1, 0:FEATURE_DIM]
    ln_b = bvec_ref[BV_LNB:BV_LNB + 1, 0:FEATURE_DIM]
    b1 = bvec_ref[BV_B1:BV_B1 + 1, 0:HIDDEN_DIM]
    b2 = bvec_ref[BV_B2:BV_B2 + 1, 0:HIDDEN_DIM]
    b3 = bvec_ref[BV_B3:BV_B3 + 1, 0:2 * ACTION_DIM]
    fcw = mats_ref[MATS_FCW:MATS_FCW + N2P, 0:FEATURE_DIM]    # (N2P, 32)
    w1 = mats_ref[MATS_W1:MATS_W1 + HIDDEN_DIM, 0:HIDDEN_DIM]
    w2 = mats_ref[MATS_W2:MATS_W2 + HIDDEN_DIM, 0:HIDDEN_DIM]
    w3 = mats_ref[MATS_W3:MATS_W3 + HIDDEN_DIM, 0:2 * ACTION_DIM]

    # conv1 (3x3, stride 2) + ReLU as a lane-dense bf16 GEMM (obs/255 folded
    # into c1w); f32 accumulation on the MXU.
    y = jnp.dot(x_ref[...].astype(bf16), c1w_ref[...], preferred_element_type=f32)
    y = jnp.maximum(y + c1b, 0.0)
    # conv2 (3x3, stride 1) + ReLU as a lane-dense bf16 GEMM.
    y = jnp.dot(y.astype(bf16), c2w_ref[...], preferred_element_type=f32)
    y = jnp.maximum(y + c2b, 0.0)

    # encoder fc + LayerNorm (output_logits=True -> no tanh).  f32 throughout;
    # reductions run on the true 32-wide feature dim, never the padded lanes.
    h = jnp.dot(y, fcw, preferred_element_type=f32) + fcb
    mean = jnp.mean(h, axis=-1, keepdims=True)
    var = jnp.mean((h - mean) * (h - mean), axis=-1, keepdims=True)
    h = (h - mean) * jax.lax.rsqrt(var + LN_EPS)
    h = h * ln_g + ln_b

    # trunk MLP (f32)
    t = jnp.maximum(jnp.dot(h, w1, preferred_element_type=f32) + b1, 0.0)
    t = jnp.maximum(jnp.dot(t, w2, preferred_element_type=f32) + b2, 0.0)
    out = jnp.dot(t, w3, preferred_element_type=f32) + b3

    mu = out[:, :ACTION_DIM]
    log_std = jnp.tanh(out[:, ACTION_DIM:2 * ACTION_DIM])
    log_std = LOG_STD_MIN + 0.5 * (LOG_STD_MAX - LOG_STD_MIN) * (log_std + 1.0)
    std = jnp.exp(log_std)

    noise = noise_ref[...]
    pi = mu + noise * std

    # gaussian_logprob (sum over the true action dim only)
    log_pi = jnp.sum(-0.5 * noise * noise - log_std, axis=-1, keepdims=True)
    log_pi = log_pi - 0.5 * float(np.log(2.0 * np.pi)) * ACTION_DIM

    # squash
    mu_t = jnp.tanh(mu)
    pi_t = jnp.tanh(pi)
    log_pi = log_pi - jnp.sum(
        jnp.log(jnp.maximum(1.0 - pi_t * pi_t, 0.0) + 1e-6), axis=-1, keepdims=True)

    # Pack the four tiny results at 128-aligned lane offsets of one (B, 4*LANE)
    # slab -> a single lane-dense writeback DMA.  The previous zero-fill of the
    # whole slab is dropped (unused lanes are never read by the wrapper); only
    # these four small aligned stores remain.
    o_ref[:, 0:ACTION_DIM] = mu_t
    o_ref[:, LANE:LANE + ACTION_DIM] = pi_t
    o_ref[:, 2 * LANE:2 * LANE + 1] = log_pi
    o_ref[:, 3 * LANE:3 * LANE + ACTION_DIM] = log_std


# ------------------------------ JAX wrapper ----------------------------------
@jax.jit
def actor_forward(obs, noise, kparams):
    """obs: (B, C, H, W) float32 in [0, 255]; noise: (B, action_dim).

    Returns (mu, pi, log_pi, log_std), matching Actor.forward with
    compute_pi=compute_log_pi=True.
    """
    B = obs.shape[0]
    x = obs.reshape(B, -1)  # free NCHW flatten; the only out-of-kernel op
    packed = pl.pallas_call(
        _actor_fused_kernel,
        out_shape=jax.ShapeDtypeStruct((B, 4 * LANE), jnp.float32),
        in_specs=[VMEM_SPEC] * 6,
        out_specs=VMEM_SPEC,
        # Grid-less at B=2.  For large batch: grid over batch rows (block a
        # multiple of 8, ideally >=128), dimension_semantics=("parallel",),
        # weight index_maps -> (0, 0) so weights stay resident (v7x 2x TC win).
    )(x, noise, kparams["c1w"], kparams["c2w"], kparams["bvec"], kparams["mats"])
    mu = packed[:, 0:ACTION_DIM]
    pi = packed[:, LANE:LANE + ACTION_DIM]
    log_pi = packed[:, 2 * LANE:2 * LANE + 1]
    log_std = packed[:, 3 * LANE:3 * LANE + ACTION_DIM]
    return mu, pi, log_pi, log_std


# ------------------------------ pure-JAX reference ---------------------------
def actor_reference(obs, raw, noise):
    hi = jax.lax.Precision.HIGHEST
    B = obs.shape[0]
    x = obs / 255.0
    dn = ("NCHW", "OIHW", "NCHW")
    c1 = jax.lax.conv_general_dilated(x, raw["conv1_w"], (2, 2), "VALID",
                                      dimension_numbers=dn, precision=hi)
    c1 = jax.nn.relu(c1 + raw["conv1_b"][None, :, None, None])
    c2 = jax.lax.conv_general_dilated(c1, raw["conv2_w"], (1, 1), "VALID",
                                      dimension_numbers=dn, precision=hi)
    c2 = jax.nn.relu(c2 + raw["conv2_b"][None, :, None, None])
    h = c2.reshape(B, -1)
    h = jnp.dot(h, raw["fc_w"].T, precision=hi) + raw["fc_b"]
    mean = h.mean(-1, keepdims=True)
    var = ((h - mean) ** 2).mean(-1, keepdims=True)
    h = (h - mean) / jnp.sqrt(var + LN_EPS) * raw["ln_g"] + raw["ln_b"]
    x1 = jax.nn.relu(jnp.dot(h, raw["w1"].T, precision=hi) + raw["b1"])
    x2 = jax.nn.relu(jnp.dot(x1, raw["w2"].T, precision=hi) + raw["b2"])
    out = jnp.dot(x2, raw["w3"].T, precision=hi) + raw["b3"]
    mu, log_std = out[:, :ACTION_DIM], out[:, ACTION_DIM:]
    log_std = jnp.tanh(log_std)
    log_std = LOG_STD_MIN + 0.5 * (LOG_STD_MAX - LOG_STD_MIN) * (log_std + 1.0)
    std = jnp.exp(log_std)
    pi = mu + noise * std
    log_pi = jnp.sum(-0.5 * noise ** 2 - log_std, -1, keepdims=True)
    log_pi = log_pi - 0.5 * np.log(2 * np.pi) * ACTION_DIM
    mu, pi = jnp.tanh(mu), jnp.tanh(pi)
    log_pi = log_pi - jnp.sum(jnp.log(jax.nn.relu(1 - pi ** 2) + 1e-6), -1, keepdims=True)
    return mu, pi, log_pi, log_std


# ----------------------------------- main ------------------------------------
if __name__ == "__main__":
    kparams, raw = make_params()

    key = jax.random.PRNGKey(0)
    k_obs, k_noise = jax.random.split(key)
    obs = jax.random.uniform(k_obs, (BATCH,) + OBS_SHAPE, jnp.float32, 0.0, 255.0)
    # TODO(synk): torch.randn_like samples noise inside the module; here noise
    # is generated host-side with jax.random and passed to the kernel so the
    # reference can reproduce pi/log_pi exactly.
    noise = jax.random.normal(k_noise, (BATCH, ACTION_DIM), jnp.float32)

    mu, pi, log_pi, log_std = actor_forward(obs, noise, kparams)
    jax.block_until_ready((mu, pi, log_pi, log_std))

    # Sanity check against a pure-JAX f32 (HIGHEST) reference.  The kernel
    # stores the conv GEMM weights in bf16 and runs single-pass bf16 MXU
    # matmuls (per perf review), so it is not bit-equivalent to the f32
    # reference; tolerance is widened accordingly.
    rmu, rpi, rlogpi, rlogstd = actor_reference(obs, raw, noise)
    np.testing.assert_allclose(np.asarray(mu), np.asarray(rmu), atol=2e-2, rtol=2e-2)
    np.testing.assert_allclose(np.asarray(pi), np.asarray(rpi), atol=2e-2, rtol=2e-2)
    np.testing.assert_allclose(np.asarray(log_pi), np.asarray(rlogpi), atol=2e-2, rtol=2e-2)
    np.testing.assert_allclose(np.asarray(log_std), np.asarray(rlogstd), atol=2e-2, rtol=2e-2)

    print("KERNEL_OK")
</pallas_src>

<mosaic_0001>
module attributes {stable_mosaic.version = 11 : i64} {
  func.func @_actor_fused_kernel(%arg0: memref<2x1024xf32, #tpu.memory_space<vmem>>, %arg1: memref<2x4xf32, #tpu.memory_space<vmem>>, %arg2: memref<1024x512xbf16, #tpu.memory_space<vmem>>, %arg3: memref<512x256xbf16, #tpu.memory_space<vmem>>, %arg4: memref<8x512xf32, #tpu.memory_space<vmem>>, %arg5: memref<352x32xf32, #tpu.memory_space<vmem>>, %arg6: memref<2x512xf32, #tpu.memory_space<vmem>>) attributes {dimension_semantics = [], scalar_prefetch = 0 : i64, scratch_operands = 0 : i64, tpu.core_type = #tpu.core_type<tc>} {
    %c0 = arith.constant 0 : index
    %c0_0 = arith.constant 0 : index
    %0 = vector.load %arg4[%c0, %c0_0] : memref<8x512xf32, #tpu.memory_space<vmem>>, vector<1x512xf32>
    %c1 = arith.constant 1 : index
    %c0_1 = arith.constant 0 : index
    %1 = vector.load %arg4[%c1, %c0_1] : memref<8x512xf32, #tpu.memory_space<vmem>>, vector<1x256xf32>
    %c2 = arith.constant 2 : index
    %c0_2 = arith.constant 0 : index
    %2 = vector.load %arg4[%c2, %c0_2] : memref<8x512xf32, #tpu.memory_space<vmem>>, vector<1x32xf32>
    %c3 = arith.constant 3 : index
    %c0_3 = arith.constant 0 : index
    %3 = vector.load %arg4[%c3, %c0_3] : memref<8x512xf32, #tpu.memory_space<vmem>>, vector<1x32xf32>
    %c4 = arith.constant 4 : index
    %c0_4 = arith.constant 0 : index
    %4 = vector.load %arg4[%c4, %c0_4] : memref<8x512xf32, #tpu.memory_space<vmem>>, vector<1x32xf32>
    %c5 = arith.constant 5 : index
    %c0_5 = arith.constant 0 : index
    %5 = vector.load %arg4[%c5, %c0_5] : memref<8x512xf32, #tpu.memory_space<vmem>>, vector<1x32xf32>
    %c6 = arith.constant 6 : index
    %c0_6 = arith.constant 0 : index
    %6 = vector.load %arg4[%c6, %c0_6] : memref<8x512xf32, #tpu.memory_space<vmem>>, vector<1x32xf32>
    %c7 = arith.constant 7 : index
    %c0_7 = arith.constant 0 : index
    %7 = vector.load %arg4[%c7, %c0_7] : memref<8x512xf32, #tpu.memory_space<vmem>>, vector<1x8xf32>
    %c0_8 = arith.constant 0 : index
    %c0_9 = arith.constant 0 : index
    %8 = vector.load %arg5[%c0_8, %c0_9] : memref<352x32xf32, #tpu.memory_space<vmem>>, vector<256x32xf32>
    %c256 = arith.constant 256 : index
    %c0_10 = arith.constant 0 : index
    %9 = vector.load %arg5[%c256, %c0_10] : memref<352x32xf32, #tpu.memory_space<vmem>>, vector<32x32xf32>
    %c288 = arith.constant 288 : index
    %c0_11 = arith.constant 0 : index
    %10 = vector.load %arg5[%c288, %c0_11] : memref<352x32xf32, #tpu.memory_space<vmem>>, vector<32x32xf32>
    %c320 = arith.constant 320 : index
    %c0_12 = arith.constant 0 : index
    %11 = vector.load %arg5[%c320, %c0_12] : memref<352x32xf32, #tpu.memory_space<vmem>>, vector<32x8xf32>
    %c0_13 = arith.constant 0 : index
    %c0_14 = arith.constant 0 : index
    %12 = vector.load %arg0[%c0_13, %c0_14] : memref<2x1024xf32, #tpu.memory_space<vmem>>, vector<2x1024xf32>
    %13 = arith.truncf %12 : vector<2x1024xf32> to vector<2x1024xbf16>
    %c0_15 = arith.constant 0 : index
    %c0_16 = arith.constant 0 : index
    %14 = vector.load %arg2[%c0_15, %c0_16] : memref<1024x512xbf16, #tpu.memory_space<vmem>>, vector<1024x512xbf16>
    %cst = arith.constant dense<0.000000e+00> : vector<2x512xf32>
    %15 = tpu.matmul %13, %14, %cst {dimension_numbers = #tpu.dot_dimension_numbers<[1], [0], [0], [1], [0, 0, 1, 1], [], []>} : vector<2x1024xbf16>, vector<1024x512xbf16>, vector<2x512xf32> -> vector<2x512xf32>
    %16 = vector.broadcast %0 : vector<1x512xf32> to vector<2x512xf32>
    %17 = arith.addf %15, %16 : vector<2x512xf32>
    %cst_17 = arith.constant 0.000000e+00 : f32
    %18 = vector.broadcast %cst_17 : f32 to vector<2x512xf32>
    %19 = arith.maximumf %17, %18 : vector<2x512xf32>
    %20 = arith.truncf %19 : vector<2x512xf32> to vector<2x512xbf16>
    %c0_18 = arith.constant 0 : index
    %c0_19 = arith.constant 0 : index
    %21 = vector.load %arg3[%c0_18, %c0_19] : memref<512x256xbf16, #tpu.memory_space<vmem>>, vector<512x256xbf16>
    %cst_20 = arith.constant dense<0.000000e+00> : vector<2x256xf32>
    %22 = tpu.matmul %20, %21, %cst_20 {dimension_numbers = #tpu.dot_dimension_numbers<[1], [0], [0], [1], [0, 0, 1, 1], [], []>} : vector<2x512xbf16>, vector<512x256xbf16>, vector<2x256xf32> -> vector<2x256xf32>
    %23 = vector.broadcast %1 : vector<1x256xf32> to vector<2x256xf32>
    %24 = arith.addf %22, %23 : vector<2x256xf32>
    %cst_21 = arith.constant 0.000000e+00 : f32
    %25 = vector.broadcast %cst_21 : f32 to vector<2x256xf32>
    %26 = arith.maximumf %24, %25 : vector<2x256xf32>
    %cst_22 = arith.constant dense<0.000000e+00> : vector<2x32xf32>
    %27 = tpu.matmul %26, %8, %cst_22 {dimension_numbers = #tpu.dot_dimension_numbers<[1], [0], [0], [1], [0, 0, 1, 1], [], []>} : vector<2x256xf32>, vector<256x32xf32>, vector<2x32xf32> -> vector<2x32xf32>
    %28 = vector.broadcast %2 : vector<1x32xf32> to vector<2x32xf32>
    %29 = arith.addf %27, %28 : vector<2x32xf32>
    %cst_23 = arith.constant dense<0.000000e+00> : vector<2xf32>
    %30 = vector.multi_reduction <add>, %29, %cst_23 [1] : vector<2x32xf32> to vector<2xf32>
    %31 = vector.shape_cast %30 : vector<2xf32> to vector<2x1xf32>
    %cst_24 = arith.constant 3.200000e+01 : f32
    %32 = vector.broadcast %cst_24 : f32 to vector<2x1xf32>
    %33 = arith.divf %31, %32 : vector<2x1xf32>
    %34 = vector.broadcast %33 : vector<2x1xf32> to vector<2x32xf32>
    %35 = arith.subf %29, %34 : vector<2x32xf32>
    %36 = vector.broadcast %33 : vector<2x1xf32> to vector<2x32xf32>
    %37 = arith.subf %29, %36 : vector<2x32xf32>
    %38 = arith.mulf %35, %37 : vector<2x32xf32>
    %cst_25 = arith.constant dense<0.000000e+00> : vector<2xf32>
    %39 = vector.multi_reduction <add>, %38, %cst_25 [1] : vector<2x32xf32> to vector<2xf32>
    %40 = vector.shape_cast %39 : vector<2xf32> to vector<2x1xf32>
    %cst_26 = arith.constant 3.200000e+01 : f32
    %41 = vector.broadcast %cst_26 : f32 to vector<2x1xf32>
    %42 = arith.divf %40, %41 : vector<2x1xf32>
    %43 = vector.broadcast %33 : vector<2x1xf32> to vector<2x32xf32>
    %44 = arith.subf %29, %43 : vector<2x32xf32>
    %cst_27 = arith.constant 9.99999974E-6 : f32
    %45 = vector.broadcast %cst_27 : f32 to vector<2x1xf32>
    %46 = arith.addf %42, %45 : vector<2x1xf32>
    %47 = math.rsqrt %46 : vector<2x1xf32>
    %48 = vector.broadcast %47 : vector<2x1xf32> to vector<2x32xf32>
    %49 = arith.mulf %44, %48 : vector<2x32xf32>
    %50 = vector.broadcast %3 : vector<1x32xf32> to vector<2x32xf32>
    %51 = arith.mulf %49, %50 : vector<2x32xf32>
    %52 = vector.broadcast %4 : vector<1x32xf32> to vector<2x32xf32>
    %53 = arith.addf %51, %52 : vector<2x32xf32>
    %cst_28 = arith.constant dense<0.000000e+00> : vector<2x32xf32>
    %54 = tpu.matmul %53, %9, %cst_28 {dimension_numbers = #tpu.dot_dimension_numbers<[1], [0], [0], [1], [0, 0, 1, 1], [], []>} : vector<2x32xf32>, vector<32x32xf32>, vector<2x32xf32> -> vector<2x32xf32>
    %55 = vector.broadcast %5 : vector<1x32xf32> to vector<2x32xf32>
    %56 = arith.addf %54, %55 : vector<2x32xf32>
    %cst_29 = arith.constant 0.000000e+00 : f32
    %57 = vector.broadcast %cst_29 : f32 to vector<2x32xf32>
    %58 = arith.maximumf %56, %57 : vector<2x32xf32>
    %cst_30 = arith.constant dense<0.000000e+00> : vector<2x32xf32>
    %59 = tpu.matmul %58, %10, %cst_30 {dimension_numbers = #tpu.dot_dimension_numbers<[1], [0], [0], [1], [0, 0, 1, 1], [], []>} : vector<2x32xf32>, vector<32x32xf32>, vector<2x32xf32> -> vector<2x32xf32>
    %60 = vector.broadcast %6 : vector<1x32xf32> to vector<2x32xf32>
    %61 = arith.addf %59, %60 : vector<2x32xf32>
    %cst_31 = arith.constant 0.000000e+00 : f32
    %62 = vector.broadcast %cst_31 : f32 to vector<2x32xf32>
    %63 = arith.maximumf %61, %62 : vector<2x32xf32>
    %cst_32 = arith.constant dense<0.000000e+00> : vector<2x8xf32>
    %64 = tpu.matmul %63, %11, %cst_32 {dimension_numbers = #tpu.dot_dimension_numbers<[1], [0], [0], [1], [0, 0, 1, 1], [], []>} : vector<2x32xf32>, vector<32x8xf32>, vector<2x8xf32> -> vector<2x8xf32>
    %65 = vector.broadcast %7 : vector<1x8xf32> to vector<2x8xf32>
    %66 = arith.addf %64, %65 : vector<2x8xf32>
    %67 = vector.extract_strided_slice %66 {offsets = [0, 0], sizes = [2, 4], strides = [1, 1]} : vector<2x8xf32> to vector<2x4xf32>
    %68 = vector.extract_strided_slice %66 {offsets = [0, 4], sizes = [2, 4], strides = [1, 1]} : vector<2x8xf32> to vector<2x4xf32>
    %69 = math.tanh %68 : vector<2x4xf32>
    %cst_33 = arith.constant 1.000000e+00 : f32
    %70 = vector.broadcast %cst_33 : f32 to vector<2x4xf32>
    %71 = arith.addf %69, %70 : vector<2x4xf32>
    %cst_34 = arith.constant 6.000000e+00 : f32
    %72 = vector.broadcast %cst_34 : f32 to vector<2x4xf32>
    %73 = arith.mulf %72, %71 : vector<2x4xf32>
    %cst_35 = arith.constant -1.000000e+01 : f32
    %74 = vector.broadcast %cst_35 : f32 to vector<2x4xf32>
    %75 = arith.addf %74, %73 : vector<2x4xf32>
    %76 = math.exp %75 : vector<2x4xf32>
    %c0_36 = arith.constant 0 : index
    %c0_37 = arith.constant 0 : index
    %77 = vector.load %arg1[%c0_36, %c0_37] : memref<2x4xf32, #tpu.memory_space<vmem>>, vector<2x4xf32>
    %78 = arith.mulf %77, %76 : vector<2x4xf32>
    %79 = arith.addf %67, %78 : vector<2x4xf32>
    %cst_38 = arith.constant -5.000000e-01 : f32
    %80 = vector.broadcast %cst_38 : f32 to vector<2x4xf32>
    %81 = arith.mulf %80, %77 : vector<2x4xf32>
    %82 = arith.mulf %81, %77 : vector<2x4xf32>
    %83 = arith.subf %82, %75 : vector<2x4xf32>
    %cst_39 = arith.constant dense<0.000000e+00> : vector<2xf32>
    %84 = vector.multi_reduction <add>, %83, %cst_39 [1] : vector<2x4xf32> to vector<2xf32>
    %85 = vector.shape_cast %84 : vector<2xf32> to vector<2x1xf32>
    %cst_40 = arith.constant 3.67575407 : f32
    %86 = vector.broadcast %cst_40 : f32 to vector<2x1xf32>
    %87 = arith.subf %85, %86 : vector<2x1xf32>
    %88 = math.tanh %67 : vector<2x4xf32>
    %89 = math.tanh %79 : vector<2x4xf32>
    %90 = arith.mulf %89, %89 : vector<2x4xf32>
    %cst_41 = arith.constant 1.000000e+00 : f32
    %91 = vector.broadcast %cst_41 : f32 to vector<2x4xf32>
    %92 = arith.subf %91, %90 : vector<2x4xf32>
    %cst_42 = arith.constant 0.000000e+00 : f32
    %93 = vector.broadcast %cst_42 : f32 to vector<2x4xf32>
    %94 = arith.maximumf %92, %93 : vector<2x4xf32>
    %cst_43 = arith.constant 9.99999997E-7 : f32
    %95 = vector.broadcast %cst_43 : f32 to vector<2x4xf32>
    %96 = arith.addf %94, %95 : vector<2x4xf32>
    %97 = math.log %96 : vector<2x4xf32>
    %cst_44 = arith.constant dense<0.000000e+00> : vector<2xf32>
    %98 = vector.multi_reduction <add>, %97, %cst_44 [1] : vector<2x4xf32> to vector<2xf32>
    %99 = vector.shape_cast %98 : vector<2xf32> to vector<2x1xf32>
    %100 = arith.subf %87, %99 : vector<2x1xf32>
    %c0_45 = arith.constant 0 : index
    %c0_46 = arith.constant 0 : index
    %101 = vector.load %arg6[%c0_45, %c0_46] : memref<2x512xf32, #tpu.memory_space<vmem>>, vector<2x4xf32>
    tpu.vector_store %arg6[%c0_45, %c0_46], %88 {strides = array<i32>} : memref<2x512xf32, #tpu.memory_space<vmem>>, vector<2x4xf32>,
    %c0_47 = arith.constant 0 : index
    %c128 = arith.constant 128 : index
    %102 = vector.load %arg6[%c0_47, %c128] : memref<2x512xf32, #tpu.memory_space<vmem>>, vector<2x4xf32>
    tpu.vector_store %arg6[%c0_47, %c128], %89 {strides = array<i32>} : memref<2x512xf32, #tpu.memory_space<vmem>>, vector<2x4xf32>,
    %c0_48 = arith.constant 0 : index
    %c256_49 = arith.constant 256 : index
    %103 = vector.load %arg6[%c0_48, %c256_49] : memref<2x512xf32, #tpu.memory_space<vmem>>, vector<2x1xf32>
    tpu.vector_store %arg6[%c0_48, %c256_49], %100 {strides = array<i32>} : memref<2x512xf32, #tpu.memory_space<vmem>>, vector<2x1xf32>,
    %c0_50 = arith.constant 0 : index
    %c384 = arith.constant 384 : index
    %104 = vector.load %arg6[%c0_50, %c384] : memref<2x512xf32, #tpu.memory_space<vmem>>, vector<2x4xf32>
    tpu.vector_store %arg6[%c0_50, %c384], %75 {strides = array<i32>} : memref<2x512xf32, #tpu.memory_space<vmem>>, vector<2x4xf32>,
    return
  }
}

</mosaic_0001>

<bundles_post_ra>
// kernel: actor_forward.1
= control target key start
LH: loop header
LB: loop body
LE: loop exit
PB: predicated region body
PF: predicated region fallthrough
CT: control target
= control target key end

     0   :  { %11 = vsyncpa [#allocation3], 0  ;;  %s4429_s0 = inlined_call_operand.vmem [shape: f32[2,1024], index: 0, kind: input, shape index: {}]   ;;  %s4430_s1 = inlined_call_operand.vmem [shape: f32[2,4], index: 1, kind: input, shape index: {}]   ;;  %s4431_s2 = inlined_call_operand.hbm [shape: bf16[1024,512], index: 2, kind: input, shape index: {}]   ;;  %s4432_s3 = inlined_call_operand.vmem [shape: bf16[512,256], index: 3, kind: input, shape index: {}]   ;;  %s4433_s4 = inlined_call_operand.hbm [shape: f32[8,512], index: 4, kind: input, shape index: {}]   ;;  %s4434_s5 = inlined_call_operand.vmem [shape: f32[352,32], index: 5, kind: input, shape index: {}]   ;;  %s4435_s6 = inlined_call_operand.vmem [shape: f32[2,512], index: 6, kind: output, shape index: {}]  }
   0x1   :  { %12 = vsyncpa [#allocation5], 0  ;;  %s3932_s21 = smov [#allocation2]   ;;  %s3884_s25 = scalar_lea.hbm %s4431_s2, 32768 }
   0x2   :  { %s22_s22 = sshll.u32 %s3932_s21, 4  ;;  %p3885_p0 = scmp.ne.s32.totalorder %s4431_s2, %s3884_s25  ;;  %s23_s22 = int_to_ptr.vmem [resolvable:$true] %s22_s22 }
   0x3   :  { %p3888_p1 = scmp.lt.u32.totalorder %s3884_s25, %s4431_s2 }
   0x5   :  { %p3890_p2 = pnand %p3888_p1, %p3885_p0 }
   0x7   :  { %3893 = shalt.err (!%p3890_p2)
}
   0x8   :  { %s3894_s30 = scalar_lea.vmem %s23_s22, 32768  ;;  %p3899_p4 = scmp.lt.s32.totalorder %s23_s22, %s23_s22 }
   0x9   :  { %p3895_p3 = scmp.ne.s32.totalorder %s23_s22, %s3894_s30  ;;  %p3900_p5 = scmp.lt.s32.totalorder %s3894_s30, %s3894_s30 }
   0xb   :  { %p3901_p6 = por %p3900_p5, %p3899_p4 }
   0xd   :  { %p3902_p7 = pnand %p3901_p6, %p3895_p3 }
   0xf   :  { %3905 = shalt.err (!%p3902_p7)
}
  0x10   :  { %s3933_s7 = smov 256   ;;  %s3934_s8 = smov 16  }
  0x11   :  { %28 = dma.hbm_to_vmem [thread:$0]  %s4431_s2, 32768, %s23_s22, [#allocation3], %s3933_s7, %s3933_s7, %s3934_s8  }
  0x12   :  { %s3935_s11 = smov [#allocation4]   ;;  %s3906_s15 = scalar_lea.hbm %s4433_s4, 512 }
  0x13   :  { %s37_s12 = sshll.u32 %s3935_s11, 4  ;;  %p3907_p8 = scmp.ne.s32.totalorder %s4433_s4, %s3906_s15  ;;  %s38_s12 = int_to_ptr.vmem [resolvable:$true] %s37_s12 }
  0x14   :  { %p3910_p9 = scmp.lt.u32.totalorder %s3906_s15, %s4433_s4 }
  0x16   :  { %p3912_p10 = pnand %p3910_p9, %p3907_p8 }
  0x18   :  { %3915 = shalt.err (!%p3912_p10)
}
  0x19   :  { %s3916_s20 = scalar_lea.vmem %s38_s12, 512  ;;  %p3921_p12 = scmp.lt.s32.totalorder %s38_s12, %s38_s12 }
  0x1a   :  { %p3917_p11 = scmp.ne.s32.totalorder %s38_s12, %s3916_s20  ;;  %p3922_p13 = scmp.lt.s32.totalorder %s3916_s20, %s3916_s20 }
  0x1c   :  { %p3923_p0 = por %p3922_p13, %p3921_p12 }
  0x1e   :  { %p3924_p1 = pnand %p3923_p0, %p3917_p11 }
  0x20   :  { %3927 = shalt.err (!%p3924_p1)
}
  0x21   :  { %40 = dma.hbm_to_vmem [thread:$0]  %s4433_s4, 512, %s38_s12, [#allocation5]  }
  0x22   :  { %3928 = dma.done.wait [#allocation3], 32768  }
  0x23   :  { %3929 = vsyncadd [#allocation3], 4294934528 }
  0x24   :  { %3930 = dma.done.wait [#allocation5], 512  }
  0x25   :  { %3931 = vsyncadd [#allocation5], 4294966784  ;;  %v3392_v0 = vld [vmem:[#allocation2 + $0x4] ss:$16 sps:$4 sm:$0xff]   ;;  %v3396_v2 = vld [vmem:[#allocation2] ss:$16 sps:$4 sm:$0xff]   ;;  %v110_v38 = vlaneseq }
  0x26   :  { %v3394_v1 = vld [vmem:[#allocation2 + $0x204] ss:$16 sps:$4 sm:$0xff]   ;;  %1713 = vmatprep.subr.bf16.mxu1 %v3392_v0  ;;  %v3397_v3 = vld [vmem:[#allocation2 + $0x200] ss:$16 sps:$4 sm:$0xff]   ;;  %v3936_v36 = vmov 1983009808  }
  0x27   :  { %1754 = vmatprep.subr.bf16.mxu0 %v3394_v1  ;;  %v3398_v4 = vld [vmem:[#allocation2 + $0x24] ss:$16 sps:$4 sm:$0xff]   ;;  %1714 = vmatpush1.bf16.msra.mxu1 %v3396_v2  ;;  %v3402_v6 = vld [vmem:[#allocation2 + $0x20] ss:$16 sps:$4 sm:$0xff]   ;;  %v108_v37 = vunpack.c.l.s4 %v3936_v36  ;;  %v4000_v43 = vshrl.u32 %v110_v38, 7  ;;  %vm2598_vm0 = vcmask 254976  }
  0x28   :  { %1755 = vmatpush1.bf16.msra.mxu0 %v3397_v3  ;;  %v3400_v5 = vld [vmem:[#allocation2 + $0x224] ss:$16 sps:$4 sm:$0xff]   ;;  %1715 = vmatprep.subr.bf16.mxu1 %v3398_v4  ;;  %v3403_v7 = vld [vmem:[#allocation2 + $0x220] ss:$16 sps:$4 sm:$0xff]   ;;  %vm3938_vm1 = vmmov 0   ;;  %vm2615_vm2 = vcmask 261120  }
  0x29   :  { %1756 = vmatprep.subr.bf16.mxu0 %v3400_v5  ;;  %v3404_v8 = vld [vmem:[#allocation2 + $0x44] ss:$16 sps:$4 sm:$0xff]   ;;  %v3408_v10 = vld [vmem:[#allocation2 + $0x40] ss:$16 sps:$4 sm:$0xff]   ;;  %v109_v42 = vunpack.c.0.s8 %v108_v37  ;;  %v3524_v37 = vld [vmem:[#allocation2 + $0xac] ss:$16 sps:$4 sm:$0xff]  }
  0x2a   :  { %v3406_v9 = vld [vmem:[#allocation2 + $0x244] ss:$16 sps:$4 sm:$0xff]   ;;  %v3409_v11 = vld [vmem:[#allocation2 + $0x240] ss:$16 sps:$4 sm:$0xff]   ;;  %vm2857_vm3 = vcmask 25600   ;;  %s3940_s22 = smov 124  }
  0x2b   :  { %1716 = vmatpush1.bf16.msra.mxu1 %v3402_v6  ;;  %v3410_v12 = vld [vmem:[#allocation2 + $0x64] ss:$16 sps:$4 sm:$0xff]   ;;  %v3414_v14 = vld [vmem:[#allocation2 + $0x60] ss:$16 sps:$4 sm:$0xff]   ;;  %v4003_v49 = vsub.s32 %v109_v42, %v4000_v43  ;;  %v4022_v42 = vld [vmem:[%s4429_s0 + $0x8] sm:$0xff]  ;;  %vm2875_vm4 = vcmask 1024  }
  0x2c   :  { %1757 = vmatpush1.bf16.msra.mxu0 %v3403_v7  ;;  %1717 = vmatprep.subr.bf16.mxu1 %v3404_v8  ;;  %v3412_v13 = vld [vmem:[#allocation2 + $0x264] ss:$16 sps:$4 sm:$0xff]   ;;  %v3415_v15 = vld [vmem:[#allocation2 + $0x260] ss:$16 sps:$4 sm:$0xff]  }
  0x2d   :  { %1758 = vmatprep.subr.bf16.mxu0 %v3406_v9  ;;  %v3416_v16 = vld [vmem:[#allocation2 + $0x84] ss:$16 sps:$4 sm:$0xff]   ;;  %v3420_v18 = vld [vmem:[#allocation2 + $0x80] ss:$16 sps:$4 sm:$0xff]  }
  0x2e   :  { %v3418_v17 = vld [vmem:[#allocation2 + $0x284] ss:$16 sps:$4 sm:$0xff]   ;;  %v3421_v19 = vld [vmem:[#allocation2 + $0x280] ss:$16 sps:$4 sm:$0xff]  }
  0x2f   :  { %1718 = vmatpush1.bf16.msra.mxu1 %v3408_v10  ;;  %v3422_v20 = vld [vmem:[#allocation2 + $0xa4] ss:$16 sps:$4 sm:$0xff]   ;;  %v3426_v22 = vld [vmem:[#allocation2 + $0xa0] ss:$16 sps:$4 sm:$0xff]  }
  0x30   :  { %1759 = vmatpush1.bf16.msra.mxu0 %v3409_v11  ;;  %1719 = vmatprep.subr.bf16.mxu1 %v3410_v12  ;;  %v3424_v21 = vld [vmem:[#allocation2 + $0x2a4] ss:$16 sps:$4 sm:$0xff]   ;;  %v3427_v23 = vld [vmem:[#allocation2 + $0x2a0] ss:$16 sps:$4 sm:$0xff]  }
  0x31   :  { %1760 = vmatprep.subr.bf16.mxu0 %v3412_v13  ;;  %v3428_v24 = vld [vmem:[#allocation2 + $0xc4] ss:$16 sps:$4 sm:$0xff]   ;;  %v3432_v26 = vld [vmem:[#allocation2 + $0xc0] ss:$16 sps:$4 sm:$0xff]  }
  0x32   :  { %v3430_v25 = vld [vmem:[#allocation2 + $0x2c4] ss:$16 sps:$4 sm:$0xff]   ;;  %v3433_v27 = vld [vmem:[#allocation2 + $0x2c0] ss:$16 sps:$4 sm:$0xff]  }
  0x33   :  { %1720 = vmatpush1.bf16.msra.mxu1 %v3414_v14  ;;  %v3434_v28 = vld [vmem:[#allocation2 + $0xe4] ss:$16 sps:$4 sm:$0xff]   ;;  %v3438_v30 = vld [vmem:[#allocation2 + $0xe0] ss:$16 sps:$4 sm:$0xff]  }
  0x34   :  { %1761 = vmatpush1.bf16.msra.mxu0 %v3415_v15  ;;  %1721 = vmatprep.subr.bf16.mxu1 %v3416_v16  ;;  %v3436_v29 = vld [vmem:[#allocation2 + $0x2e4] ss:$16 sps:$4 sm:$0xff]   ;;  %v3439_v31 = vld [vmem:[#allocation2 + $0x2e0] ss:$16 sps:$4 sm:$0xff]   ;;  %v3494_v15 = vld [vmem:[#allocation2 + $0xc] ss:$16 sps:$4 sm:$0xff]  }
  0x35   :  { %1762 = vmatprep.subr.bf16.mxu0 %v3418_v17  ;;  %v3440_v32 = vld [vmem:[#allocation2 + $0x104] ss:$16 sps:$4 sm:$0xff]   ;;  %v3444_v34 = vld [vmem:[#allocation2 + $0x100] ss:$16 sps:$4 sm:$0xff]  }
  0x36   :  { %v3442_v33 = vld [vmem:[#allocation2 + $0x304] ss:$16 sps:$4 sm:$0xff]   ;;  %v3445_v35 = vld [vmem:[#allocation2 + $0x300] ss:$16 sps:$4 sm:$0xff]  }
  0x37   :  { %1722 = vmatpush1.bf16.msra.mxu1 %v3420_v18  ;;  %v3446_v39 = vld [vmem:[#allocation2 + $0x124] ss:$16 sps:$4 sm:$0xff]   ;;  %v3450_v41 = vld [vmem:[#allocation2 + $0x120] ss:$16 sps:$4 sm:$0xff]  }
  0x38   :  { %1763 = vmatpush1.bf16.msra.mxu0 %v3421_v19  ;;  %1723 = vmatprep.subr.bf16.mxu1 %v3422_v20  ;;  %v3448_v40 = vld [vmem:[#allocation2 + $0x324] ss:$16 sps:$4 sm:$0xff]   ;;  %v3451_v44 = vld [vmem:[#allocation2 + $0x320] ss:$16 sps:$4 sm:$0xff]   ;;  %v3492_v19 = vld [vmem:[#allocation2 + $0x8] ss:$16 sps:$4 sm:$0xff]  }
  0x39   :  { %1764 = vmatprep.subr.bf16.mxu0 %v3424_v21  ;;  %v3452_v45 = vld [vmem:[#allocation2 + $0x144] ss:$16 sps:$4 sm:$0xff]   ;;  %v3456_v47 = vld [vmem:[#allocation2 + $0x140] ss:$16 sps:$4 sm:$0xff]   ;;  %v3500_v21 = vld [vmem:[#allocation2 + $0x2c] ss:$16 sps:$4 sm:$0xff]  }
  0x3a   :  { %v3454_v46 = vld [vmem:[#allocation2 + $0x344] ss:$16 sps:$4 sm:$0xff]   ;;  %v3457_v48 = vld [vmem:[#allocation2 + $0x340] ss:$16 sps:$4 sm:$0xff]  }
  0x3b   :  { %1724 = vmatpush1.bf16.msra.mxu1 %v3426_v22  ;;  %v3458_v50 = vld [vmem:[#allocation2 + $0x164] ss:$16 sps:$4 sm:$0xff]   ;;  %v3462_v53 = vld [vmem:[#allocation2 + $0x160] ss:$16 sps:$4 sm:$0xff]  }
  0x3c   :  { %1765 = vmatpush1.bf16.msra.mxu0 %v3427_v23  ;;  %1725 = vmatprep.subr.bf16.mxu1 %v3428_v24  ;;  %v3460_v51 = vld [vmem:[#allocation2 + $0x364] ss:$16 sps:$4 sm:$0xff]   ;;  %v3463_v56 = vld [vmem:[#allocation2 + $0x360] ss:$16 sps:$4 sm:$0xff]   ;;  %v3498_v23 = vld [vmem:[#allocation2 + $0x28] ss:$16 sps:$4 sm:$0xff]  }
  0x3d   :  { %1766 = vmatprep.subr.bf16.mxu0 %v3430_v25  ;;  %v102_v52 = vld [vmem:[%s4429_s0] sm:$0xff]  ;;  %v3506_v25 = vld [vmem:[#allocation2 + $0x4c] ss:$16 sps:$4 sm:$0xff]  }
  0x3e   :  { %v113_v54 = vrot.slane %v102_v52, %v4003_v49  ;;  %v106_v55 = vcombine.high %v102_v52, %v102_v52  ;;  %v3464_v57 = vld [vmem:[#allocation2 + $0x184] ss:$16 sps:$4 sm:$0xff]   ;;  %v3468_v61 = vld [vmem:[#allocation2 + $0x180] ss:$16 sps:$4 sm:$0xff]  }
  0x3f   :  { %1726 = vmatpush1.bf16.msra.mxu1 %v3432_v26  ;;  %v3466_v58 = vld [vmem:[#allocation2 + $0x384] ss:$16 sps:$4 sm:$0xff]   ;;  %v3469_v0 = vld [vmem:[#allocation2 + $0x380] ss:$16 sps:$4 sm:$0xff]  }
  0x40   :  { %1767 = vmatpush1.bf16.msra.mxu0 %v3433_v27  ;;  %1727 = vmatprep.subr.bf16.mxu1 %v3434_v28  ;;  %v121_v59 = vcombine.high %v113_v54, %v113_v54  ;;  %v120_v60 = vrot.slane %v106_v55, %v4003_v49  ;;  %v3470_v1 = vld [vmem:[#allocation2 + $0x1a4] ss:$16 sps:$4 sm:$0xff]   ;;  %v3474_v4 = vld [vmem:[#allocation2 + $0x1a0] ss:$16 sps:$4 sm:$0xff]   ;;  %v4013_v16 = vpack.c.bf16 %v113_v54, %v113_v54  ;;  %v3504_v27 = vld [vmem:[#allocation2 + $0x48] ss:$16 sps:$4 sm:$0xff]  }
  0x41   :  { %1768 = vmatprep.subr.bf16.mxu0 %v3436_v29  ;;  %v3472_v2 = vld [vmem:[#allocation2 + $0x3a4] ss:$16 sps:$4 sm:$0xff]   ;;  %v3475_v5 = vld [vmem:[#allocation2 + $0x3a0] ss:$16 sps:$4 sm:$0xff]   ;;  %v3512_v29 = vld [vmem:[#allocation2 + $0x6c] ss:$16 sps:$4 sm:$0xff]  }
  0x42   :  { %v149_v62 = vpack.c.bf16 %v121_v59, %v121_v59  ;;  %v122_v63 = vcombine.high %v120_v60, %v120_v60  ;;  %v3476_v6 = vld [vmem:[#allocation2 + $0x1c4] ss:$16 sps:$4 sm:$0xff]   ;;  %v3480_v8 = vld [vmem:[#allocation2 + $0x1c0] ss:$16 sps:$4 sm:$0xff]   ;;  %v4015_v18 = vpack.c.bf16 %v120_v60, %v120_v60  ;;  %v3542_v55 = vld [vmem:[#allocation2 + $0x10c] ss:$16 sps:$4 sm:$0xff]  }
  0x43   :  { %1728 = vmatpush1.bf16.msra.mxu1 %v3438_v30  ;;  %v3478_v7 = vld [vmem:[#allocation2 + $0x3c4] ss:$16 sps:$4 sm:$0xff]   ;;  %v3481_v9 = vld [vmem:[#allocation2 + $0x3c0] ss:$16 sps:$4 sm:$0xff]   ;;  %v3548_v59 = vld [vmem:[#allocation2 + $0x12c] ss:$16 sps:$4 sm:$0xff]  }
  0x44   :  { %1769 = vmatpush1.bf16.msra.mxu0 %v3439_v31  ;;  %1729 = vmatprep.subr.bf16.mxu1 %v3440_v32  ;;  %v4010_v3 = vpack.c.bf16 %v122_v63, %v122_v63  ;;  %v3482_v10 = vld [vmem:[#allocation2 + $0x1e4] ss:$16 sps:$4 sm:$0xff]   ;;  %v3486_v12 = vld [vmem:[#allocation2 + $0x1e0] ss:$16 sps:$4 sm:$0xff]   ;;  %v3510_v31 = vld [vmem:[#allocation2 + $0x68] ss:$16 sps:$4 sm:$0xff]  }
  0x45   :  { %1770 = vmatprep.subr.bf16.mxu0 %v3442_v33  ;;  %1745 = vmatprep.mubr.bf16.mxu1 %v149_v62  ;;  %v3484_v11 = vld [vmem:[#allocation2 + $0x3e4] ss:$16 sps:$4 sm:$0xff]   ;;  %v3487_v13 = vld [vmem:[#allocation2 + $0x3e0] ss:$16 sps:$4 sm:$0xff]   ;;  %v3518_v33 = vld [vmem:[#allocation2 + $0x8c] ss:$16 sps:$4 sm:$0xff]  }
  0x46   :  { %1786 = vmatprep.mubr.bf16.mxu0 %v4010_v3  ;;  %v3491_v14 = vld [vmem:[#allocation2 + $0x404] ss:$16 sps:$4 sm:$0xff]   ;;  %v3489_v17 = vld [vmem:[#allocation2 + $0x400] ss:$16 sps:$4 sm:$0xff]   ;;  %v3554_v63 = vld [vmem:[#allocation2 + $0x14c] ss:$16 sps:$4 sm:$0xff]  }
  0x47   :  { %1730 = vmatpush1.bf16.msra.mxu1 %v3444_v34  ;;  %v3497_v20 = vld [vmem:[#allocation2 + $0x424] ss:$16 sps:$4 sm:$0xff]   ;;  %v3495_v22 = vld [vmem:[#allocation2 + $0x420] ss:$16 sps:$4 sm:$0xff]  }
  0x48   :  { %1771 = vmatpush1.bf16.msra.mxu0 %v3445_v35  ;;  %1731 = vmatprep.subr.bf16.mxu1 %v3446_v39  ;;  %v3503_v24 = vld [vmem:[#allocation2 + $0x444] ss:$16 sps:$4 sm:$0xff]   ;;  %v3501_v26 = vld [vmem:[#allocation2 + $0x440] ss:$16 sps:$4 sm:$0xff]   ;;  %v3516_v35 = vld [vmem:[#allocation2 + $0x88] ss:$16 sps:$4 sm:$0xff]  }
  0x49   :  { %1772 = vmatprep.subr.bf16.mxu0 %v3448_v40  ;;  %v3509_v28 = vld [vmem:[#allocation2 + $0x464] ss:$16 sps:$4 sm:$0xff]   ;;  %v3507_v30 = vld [vmem:[#allocation2 + $0x460] ss:$16 sps:$4 sm:$0xff]   ;;  %v3522_v39 = vld [vmem:[#allocation2 + $0xa8] ss:$16 sps:$4 sm:$0xff]  }
  0x4a   :  { %v3515_v32 = vld [vmem:[#allocation2 + $0x484] ss:$16 sps:$4 sm:$0xff]   ;;  %v3513_v34 = vld [vmem:[#allocation2 + $0x480] ss:$16 sps:$4 sm:$0xff]  }
  0x4b   :  { %1732 = vmatpush1.bf16.msra.mxu1 %v3450_v41  ;;  %v3521_v36 = vld [vmem:[#allocation2 + $0x4a4] ss:$16 sps:$4 sm:$0xff]   ;;  %v3519_v38 = vld [vmem:[#allocation2 + $0x4a0] ss:$16 sps:$4 sm:$0xff]   ;;  %v3530_v41 = vld [vmem:[#allocation2 + $0xcc] ss:$16 sps:$4 sm:$0xff]  }
  0x4c   :  { %1773 = vmatpush1.bf16.msra.mxu0 %v3451_v44  ;;  %1733 = vmatprep.subr.bf16.mxu1 %v3452_v45  ;;  %v3527_v40 = vld [vmem:[#allocation2 + $0x4c4] ss:$16 sps:$4 sm:$0xff]   ;;  %v4026_v44 = vrot.slane %v4022_v42, %v4003_v49  ;;  %v3525_v45 = vld [vmem:[#allocation2 + $0x4c0] ss:$16 sps:$4 sm:$0xff]  }
  0x4d   :  { %1774 = vmatprep.subr.bf16.mxu0 %v3454_v46  ;;  %v3528_v46 = vld [vmem:[#allocation2 + $0xc8] ss:$16 sps:$4 sm:$0xff]   ;;  %v3531_v52 = vld [vmem:[#allocation2 + $0x4e0] ss:$16 sps:$4 sm:$0xff]   ;;  %v3539_v54 = vld [vmem:[#allocation2 + $0x504] ss:$16 sps:$4 sm:$0xff]  }
  0x4e   :  { %v3543_v60 = vld [vmem:[#allocation2 + $0x520] ss:$16 sps:$4 sm:$0xff]  }
  0x4f   :  { %1734 = vmatpush1.bf16.msra.mxu1 %v3456_v47  ;;  %v138_v47 = vcombine.high %v4026_v44, %v4026_v44 }
  0x50   :  { %1775 = vmatpush1.bf16.msra.mxu0 %v3457_v48  ;;  %1735 = vmatprep.subr.bf16.mxu1 %v3458_v50  ;;  %v3533_v48 = vld [vmem:[#allocation2 + $0x4e4] ss:$16 sps:$4 sm:$0xff]   ;;  %v3536_v50 = vld [vmem:[#allocation2 + $0xec] ss:$16 sps:$4 sm:$0xff]  }
  0x51   :  { %1776 = vmatprep.subr.bf16.mxu0 %v3460_v51  ;;  %v4030_v51 = vpack.c.bf16 %v138_v47, %v138_v47  ;;  %v3614_v47 = vld [vmem:[#allocation2 + $0x28c] ss:$16 sps:$4 sm:$0xff]  }
  0x53   :  { %1736 = vmatpush1.bf16.msra.mxu1 %v3462_v53  ;;  %v3534_v53 = vld [vmem:[#allocation2 + $0xe8] ss:$16 sps:$4 sm:$0xff]  }
  0x54   :  { %1777 = vmatpush1.bf16.msra.mxu0 %v3463_v56  ;;  %1737 = vmatprep.subr.bf16.mxu1 %v3464_v57  ;;  %v3537_v56 = vld [vmem:[#allocation2 + $0x500] ss:$16 sps:$4 sm:$0xff]   ;;  %v3540_v57 = vld [vmem:[#allocation2 + $0x108] ss:$16 sps:$4 sm:$0xff]  }
  0x55   :  { %1778 = vmatprep.subr.bf16.mxu0 %v3466_v58  ;;  %v3545_v58 = vld [vmem:[#allocation2 + $0x524] ss:$16 sps:$4 sm:$0xff]  }
  0x57   :  { %1738 = vmatpush1.bf16.msra.mxu1 %v3468_v61  ;;  %v3546_v61 = vld [vmem:[#allocation2 + $0x128] ss:$16 sps:$4 sm:$0xff]  }
  0x58   :  { %1779 = vmatpush1.bf16.msra.mxu0 %v3469_v0  ;;  %1739 = vmatprep.subr.bf16.mxu1 %v3470_v1  ;;  %v3549_v0 = vld [vmem:[#allocation2 + $0x540] ss:$16 sps:$4 sm:$0xff]   ;;  %v3552_v1 = vld [vmem:[#allocation2 + $0x148] ss:$16 sps:$4 sm:$0xff]  }
  0x59   :  { %1780 = vmatprep.subr.bf16.mxu0 %v3472_v2  ;;  %v3557_v2 = vld [vmem:[#allocation2 + $0x564] ss:$16 sps:$4 sm:$0xff]  }
  0x5b   :  { %1740 = vmatpush1.bf16.msra.mxu1 %v3474_v4  ;;  %v3560_v4 = vld [vmem:[#allocation2 + $0x16c] ss:$16 sps:$4 sm:$0xff]  }
  0x5c   :  { %1781 = vmatpush1.bf16.msra.mxu0 %v3475_v5  ;;  %1741 = vmatprep.subr.bf16.mxu1 %v3476_v6  ;;  %v3555_v5 = vld [vmem:[#allocation2 + $0x560] ss:$16 sps:$4 sm:$0xff]   ;;  %v3558_v6 = vld [vmem:[#allocation2 + $0x168] ss:$16 sps:$4 sm:$0xff]  }
  0x5d   :  { %1782 = vmatprep.subr.bf16.mxu0 %v3478_v7  ;;  %v3563_v7 = vld [vmem:[#allocation2 + $0x584] ss:$16 sps:$4 sm:$0xff]  }
  0x5f   :  { %1742 = vmatpush1.bf16.msra.mxu1 %v3480_v8  ;;  %v3566_v8 = vld [vmem:[#allocation2 + $0x18c] ss:$16 sps:$4 sm:$0xff]  }
  0x60   :  { %1783 = vmatpush1.bf16.msra.mxu0 %v3481_v9  ;;  %1743 = vmatprep.subr.bf16.mxu1 %v3482_v10  ;;  %v3561_v9 = vld [vmem:[#allocation2 + $0x580] ss:$16 sps:$4 sm:$0xff]   ;;  %v3564_v10 = vld [vmem:[#allocation2 + $0x188] ss:$16 sps:$4 sm:$0xff]  }
  0x61   :  { %1784 = vmatprep.subr.bf16.mxu0 %v3484_v11  ;;  %v3569_v11 = vld [vmem:[#allocation2 + $0x5a4] ss:$16 sps:$4 sm:$0xff]  }
  0x63   :  { %1744 = vmatpush1.bf16.msra.mxu1 %v3486_v12  ;;  %v3572_v12 = vld [vmem:[#allocation2 + $0x1ac] ss:$16 sps:$4 sm:$0xff]  }
  0x64   :  { %1785 = vmatpush1.bf16.msra.mxu0 %v3487_v13  ;;  %1877 = vmatprep.subr.bf16.mxu1 %v3494_v15  ;;  %v3567_v13 = vld [vmem:[#allocation2 + $0x5a0] ss:$16 sps:$4 sm:$0xff]   ;;  %v3575_v15 = vld [vmem:[#allocation2 + $0x5c4] ss:$16 sps:$4 sm:$0xff]  }
  0x65   :  { %1795 = vmatprep.subr.bf16.mxu0 %v3491_v14  ;;  %v3570_v14 = vld [vmem:[#allocation2 + $0x1a8] ss:$16 sps:$4 sm:$0xff]  }
  0x66   :  { %1746 = vmatmul.mubr.bf16.vlgmr.msra.gmra.mrb[0].mxu1 %v4013_v16 }
  0x67   :  { %1787 = vmatmul.mubr.bf16.vlgmr.msra.gmra.mrb[0].mxu0 %v4015_v18  ;;  %1878 = vmatpush1.bf16.msra.mxu1 %v3492_v19  ;;  %v123_v19 = vcombine.high %v4022_v42, %v4022_v42  ;;  %v3605_v42 = vld [vmem:[#allocation2 + $0x664] ss:$16 sps:$4 sm:$0xff]  }
  0x68   :  { %1796 = vmatpush1.bf16.msra.mxu0 %v3489_v17  ;;  %1879 = vmatprep.subr.bf16.mxu1 %v3500_v21  ;;  %v3578_v17 = vld [vmem:[#allocation2 + $0x1cc] ss:$16 sps:$4 sm:$0xff]   ;;  %v3576_v21 = vld [vmem:[#allocation2 + $0x1c8] ss:$16 sps:$4 sm:$0xff]  }
  0x69   :  { %1797 = vmatprep.subr.bf16.mxu0 %v3497_v20  ;;  %1909 = vmatprep.mubr.bf16.mxu1 %v149_v62  ;;  %v3551_v62 = vld [vmem:[#allocation2 + $0x544] ss:$16 sps:$4 sm:$0xff]   ;;  %v3573_v20 = vld [vmem:[#allocation2 + $0x5c0] ss:$16 sps:$4 sm:$0xff]  }
  0x6a   :  { %1827 = vmatprep.mubr.bf16.mxu0 %v4030_v51 }
  0x6b   :  { %1880 = vmatpush1.bf16.msra.mxu1 %v3498_v23  ;;  %v3584_v23 = vld [vmem:[#allocation2 + $0x1ec] ss:$16 sps:$4 sm:$0xff]  }
  0x6c   :  { %1798 = vmatpush1.bf16.msra.mxu0 %v3495_v22  ;;  %1881 = vmatprep.subr.bf16.mxu1 %v3506_v25  ;;  %v3581_v22 = vld [vmem:[#allocation2 + $0x5e4] ss:$16 sps:$4 sm:$0xff]   ;;  %v3579_v25 = vld [vmem:[#allocation2 + $0x5e0] ss:$16 sps:$4 sm:$0xff]  }
  0x6d   :  { %1799 = vmatprep.subr.bf16.mxu0 %v3503_v24  ;;  %v4036_v24 = vrot.slane %v123_v19, %v4003_v49  ;;  %v3662_v19 = vld [vmem:[#allocation2 + $0x38c] ss:$16 sps:$4 sm:$0xff]  }
  0x6f   :  { %1882 = vmatpush1.bf16.msra.mxu1 %v3504_v27  ;;  %v3587_v27 = vld [vmem:[#allocation2 + $0x604] ss:$16 sps:$4 sm:$0xff]  }
  0x70   :  { %1800 = vmatpush1.bf16.msra.mxu0 %v3501_v26  ;;  %1883 = vmatprep.subr.bf16.mxu1 %v3512_v29  ;;  %v3582_v26 = vld [vmem:[#allocation2 + $0x1e8] ss:$16 sps:$4 sm:$0xff]   ;;  %v139_v29 = vcombine.high %v4036_v24, %v4036_v24 }
  0x71   :  { %1801 = vmatprep.subr.bf16.mxu0 %v3509_v28  ;;  %v3590_v28 = vld [vmem:[#allocation2 + $0x20c] ss:$16 sps:$4 sm:$0xff]  }
  0x73   :  { %1884 = vmatpush1.bf16.msra.mxu1 %v3510_v31  ;;  %v3585_v31 = vld [vmem:[#allocation2 + $0x600] ss:$16 sps:$4 sm:$0xff]  }
  0x74   :  { %1802 = vmatpush1.bf16.msra.mxu0 %v3507_v30  ;;  %1885 = vmatprep.subr.bf16.mxu1 %v3518_v33  ;;  %v4042_v30 = vpack.c.bf16 %v4026_v44, %v4026_v44  ;;  %v3593_v33 = vld [vmem:[#allocation2 + $0x624] ss:$16 sps:$4 sm:$0xff]   ;;  %v3603_v44 = vld [vmem:[#allocation2 + $0x660] ss:$16 sps:$4 sm:$0xff]  }
  0x75   :  { %1803 = vmatprep.subr.bf16.mxu0 %v3515_v32  ;;  %v3588_v32 = vld [vmem:[#allocation2 + $0x208] ss:$16 sps:$4 sm:$0xff]  }
  0x77   :  { %1886 = vmatpush1.bf16.msra.mxu1 %v3516_v35  ;;  %v4044_v35 = vpack.c.bf16 %v139_v29, %v139_v29  ;;  %v3669_v29 = vld [vmem:[#allocation2 + $0x7c0] ss:$16 sps:$4 sm:$0xff]  }
  0x78   :  { %1804 = vmatpush1.bf16.msra.mxu0 %v3513_v34  ;;  %1887 = vmatprep.subr.bf16.mxu1 %v3524_v37  ;;  %v3596_v34 = vld [vmem:[#allocation2 + $0x22c] ss:$16 sps:$4 sm:$0xff]   ;;  %v3594_v37 = vld [vmem:[#allocation2 + $0x228] ss:$16 sps:$4 sm:$0xff]  }
  0x79   :  { %1805 = vmatprep.subr.bf16.mxu0 %v3521_v36  ;;  %v3591_v36 = vld [vmem:[#allocation2 + $0x620] ss:$16 sps:$4 sm:$0xff]  }
  0x7b   :  { %1888 = vmatpush1.bf16.msra.mxu1 %v3522_v39  ;;  %v3602_v39 = vld [vmem:[#allocation2 + $0x24c] ss:$16 sps:$4 sm:$0xff]  }
  0x7c   :  { %1806 = vmatpush1.bf16.msra.mxu0 %v3519_v38  ;;  %1889 = vmatprep.subr.bf16.mxu1 %v3530_v41  ;;  %v3599_v38 = vld [vmem:[#allocation2 + $0x644] ss:$16 sps:$4 sm:$0xff]   ;;  %v3600_v41 = vld [vmem:[#allocation2 + $0x248] ss:$16 sps:$4 sm:$0xff]  }
  0x7d   :  { %1807 = vmatprep.subr.bf16.mxu0 %v3527_v40  ;;  %v3597_v40 = vld [vmem:[#allocation2 + $0x640] ss:$16 sps:$4 sm:$0xff]  }
  0x7f   :  { %1890 = vmatpush1.bf16.msra.mxu1 %v3528_v46  ;;  %v3611_v46 = vld [vmem:[#allocation2 + $0x684] ss:$16 sps:$4 sm:$0xff]  }
  0x80   :  { %1808 = vmatpush1.bf16.msra.mxu0 %v3525_v45  ;;  %1891 = vmatprep.subr.bf16.mxu1 %v3536_v50  ;;  %v3606_v45 = vld [vmem:[#allocation2 + $0x268] ss:$16 sps:$4 sm:$0xff]   ;;  %v3617_v50 = vld [vmem:[#allocation2 + $0x6a4] ss:$16 sps:$4 sm:$0xff]  }
  0x81   :  { %1809 = vmatprep.subr.bf16.mxu0 %v3533_v48  ;;  %v3609_v48 = vld [vmem:[#allocation2 + $0x680] ss:$16 sps:$4 sm:$0xff]  }
  0x83   :  { %1892 = vmatpush1.bf16.msra.mxu1 %v3534_v53  ;;  %v3615_v53 = vld [vmem:[#allocation2 + $0x6a0] ss:$16 sps:$4 sm:$0xff]  }
  0x84   :  { %1810 = vmatpush1.bf16.msra.mxu0 %v3531_v52  ;;  %1893 = vmatprep.subr.bf16.mxu1 %v3542_v55  ;;  %v3620_v52 = vld [vmem:[#allocation2 + $0x2ac] ss:$16 sps:$4 sm:$0xff]   ;;  %v3623_v55 = vld [vmem:[#allocation2 + $0x6c4] ss:$16 sps:$4 sm:$0xff]  }
  0x85   :  { %1811 = vmatprep.subr.bf16.mxu0 %v3539_v54  ;;  %v3618_v54 = vld [vmem:[#allocation2 + $0x2a8] ss:$16 sps:$4 sm:$0xff]  }
  0x87   :  { %1894 = vmatpush1.bf16.msra.mxu1 %v3540_v57  ;;  %v3621_v57 = vld [vmem:[#allocation2 + $0x6c0] ss:$16 sps:$4 sm:$0xff]  }
  0x88   :  { %1812 = vmatpush1.bf16.msra.mxu0 %v3537_v56  ;;  %1895 = vmatprep.subr.bf16.mxu1 %v3548_v59  ;;  %v3626_v56 = vld [vmem:[#allocation2 + $0x2cc] ss:$16 sps:$4 sm:$0xff]   ;;  %v3629_v59 = vld [vmem:[#allocation2 + $0x6e4] ss:$16 sps:$4 sm:$0xff]  }
  0x89   :  { %1813 = vmatprep.subr.bf16.mxu0 %v3545_v58  ;;  %v3624_v58 = vld [vmem:[#allocation2 + $0x2c8] ss:$16 sps:$4 sm:$0xff]  }
  0x8b   :  { %1896 = vmatpush1.bf16.msra.mxu1 %v3546_v61  ;;  %v3627_v61 = vld [vmem:[#allocation2 + $0x6e0] ss:$16 sps:$4 sm:$0xff]  }
  0x8c   :  { %1814 = vmatpush1.bf16.msra.mxu0 %v3543_v60  ;;  %1897 = vmatprep.subr.bf16.mxu1 %v3554_v63  ;;  %v3632_v60 = vld [vmem:[#allocation2 + $0x2ec] ss:$16 sps:$4 sm:$0xff]   ;;  %v3635_v63 = vld [vmem:[#allocation2 + $0x704] ss:$16 sps:$4 sm:$0xff]  }
  0x8d   :  { %1815 = vmatprep.subr.bf16.mxu0 %v3551_v62  ;;  %v3630_v62 = vld [vmem:[#allocation2 + $0x2e8] ss:$16 sps:$4 sm:$0xff]  }
  0x8f   :  { %1898 = vmatpush1.bf16.msra.mxu1 %v3552_v1  ;;  %v3633_v1 = vld [vmem:[#allocation2 + $0x700] ss:$16 sps:$4 sm:$0xff]  }
  0x90   :  { %1816 = vmatpush1.bf16.msra.mxu0 %v3549_v0  ;;  %1899 = vmatprep.subr.bf16.mxu1 %v3560_v4  ;;  %v3638_v0 = vld [vmem:[#allocation2 + $0x30c] ss:$16 sps:$4 sm:$0xff]   ;;  %v3641_v4 = vld [vmem:[#allocation2 + $0x724] ss:$16 sps:$4 sm:$0xff]  }
  0x91   :  { %1817 = vmatprep.subr.bf16.mxu0 %v3557_v2  ;;  %v3636_v2 = vld [vmem:[#allocation2 + $0x308] ss:$16 sps:$4 sm:$0xff]  }
  0x93   :  { %1900 = vmatpush1.bf16.msra.mxu1 %v3558_v6  ;;  %v3639_v6 = vld [vmem:[#allocation2 + $0x720] ss:$16 sps:$4 sm:$0xff]  }
  0x94   :  { %1818 = vmatpush1.bf16.msra.mxu0 %v3555_v5  ;;  %1901 = vmatprep.subr.bf16.mxu1 %v3566_v8  ;;  %v3644_v5 = vld [vmem:[#allocation2 + $0x32c] ss:$16 sps:$4 sm:$0xff]   ;;  %v3647_v8 = vld [vmem:[#allocation2 + $0x744] ss:$16 sps:$4 sm:$0xff]  }
  0x95   :  { %1819 = vmatprep.subr.bf16.mxu0 %v3563_v7  ;;  %v3642_v7 = vld [vmem:[#allocation2 + $0x328] ss:$16 sps:$4 sm:$0xff]  }
  0x97   :  { %1902 = vmatpush1.bf16.msra.mxu1 %v3564_v10  ;;  %v3645_v10 = vld [vmem:[#allocation2 + $0x740] ss:$16 sps:$4 sm:$0xff]  }
  0x98   :  { %1820 = vmatpush1.bf16.msra.mxu0 %v3561_v9  ;;  %1903 = vmatprep.subr.bf16.mxu1 %v3572_v12  ;;  %v3650_v9 = vld [vmem:[#allocation2 + $0x34c] ss:$16 sps:$4 sm:$0xff]   ;;  %v3653_v12 = vld [vmem:[#allocation2 + $0x764] ss:$16 sps:$4 sm:$0xff]  }
  0x99   :  { %1821 = vmatprep.subr.bf16.mxu0 %v3569_v11  ;;  %v3648_v11 = vld [vmem:[#allocation2 + $0x348] ss:$16 sps:$4 sm:$0xff]  }
  0x9b   :  { %1904 = vmatpush1.bf16.msra.mxu1 %v3570_v14  ;;  %v3651_v14 = vld [vmem:[#allocation2 + $0x760] ss:$16 sps:$4 sm:$0xff]  }
  0x9c   :  { %1822 = vmatpush1.bf16.msra.mxu0 %v3567_v13  ;;  %1905 = vmatprep.subr.bf16.mxu1 %v3578_v17  ;;  %v3656_v13 = vld [vmem:[#allocation2 + $0x36c] ss:$16 sps:$4 sm:$0xff]   ;;  %v3659_v17 = vld [vmem:[#allocation2 + $0x784] ss:$16 sps:$4 sm:$0xff]  }
  0x9d   :  { %1823 = vmatprep.subr.bf16.mxu0 %v3575_v15  ;;  %v3654_v15 = vld [vmem:[#allocation2 + $0x368] ss:$16 sps:$4 sm:$0xff]  }
  0x9f   :  { %1906 = vmatpush1.bf16.msra.mxu1 %v3576_v21  ;;  %v3660_v21 = vld [vmem:[#allocation2 + $0x388] ss:$16 sps:$4 sm:$0xff]  }
  0xa0   :  { %1824 = vmatpush1.bf16.msra.mxu0 %v3573_v20  ;;  %1907 = vmatprep.subr.bf16.mxu1 %v3584_v23  ;;  %v3657_v20 = vld [vmem:[#allocation2 + $0x780] ss:$16 sps:$4 sm:$0xff]   ;;  %v3668_v23 = vld [vmem:[#allocation2 + $0x3ac] ss:$16 sps:$4 sm:$0xff]  }
  0xa1   :  { %1825 = vmatprep.subr.bf16.mxu0 %v3581_v22  ;;  %v3665_v22 = vld [vmem:[#allocation2 + $0x7a4] ss:$16 sps:$4 sm:$0xff]  }
  0xa3   :  { %1908 = vmatpush1.bf16.msra.mxu1 %v3582_v26  ;;  %v3666_v26 = vld [vmem:[#allocation2 + $0x3a8] ss:$16 sps:$4 sm:$0xff]  }
  0xa4   :  { %1826 = vmatpush1.bf16.msra.mxu0 %v3579_v25  ;;  %1918 = vmatprep.subr.bf16.mxu1 %v3590_v28  ;;  %v3663_v25 = vld [vmem:[#allocation2 + $0x7a0] ss:$16 sps:$4 sm:$0xff]   ;;  %v3674_v28 = vld [vmem:[#allocation2 + $0x3cc] ss:$16 sps:$4 sm:$0xff]  }
  0xa5   :  { %1836 = vmatprep.subr.bf16.mxu0 %v3587_v27  ;;  %v3671_v27 = vld [vmem:[#allocation2 + $0x7c4] ss:$16 sps:$4 sm:$0xff]  }
  0xa6   :  { %1910 = vmatmul.mubr.bf16.vlgmr.msra.gmra.mrb[4].mxu1 %v4013_v16  ;;  %v3608_v16 = vld [vmem:[#allocation2 + $0x26c] ss:$16 sps:$4 sm:$0xff]  }
  0xa7   :  { %1828 = vmatmul.mubr.bf16.vlgmr.msra.gmra.mrb[0].mxu0 %v4042_v30  ;;  %1919 = vmatpush1.bf16.msra.mxu1 %v3588_v32  ;;  %v3677_v32 = vld [vmem:[#allocation2 + $0x7e4] ss:$16 sps:$4 sm:$0xff]  }
  0xa8   :  { %1837 = vmatpush1.bf16.msra.mxu0 %v3585_v31  ;;  %1920 = vmatprep.subr.bf16.mxu1 %v3596_v34  ;;  %v3672_v31 = vld [vmem:[#allocation2 + $0x3c8] ss:$16 sps:$4 sm:$0xff]   ;;  %v3675_v34 = vld [vmem:[#allocation2 + $0x7e0] ss:$16 sps:$4 sm:$0xff]  }
  0xa9   :  { %1838 = vmatprep.subr.bf16.mxu0 %v3593_v33  ;;  %1868 = vmatprep.mubr.bf16.mxu0 %v4044_v35  ;;  %v3680_v33 = vld [vmem:[#allocation2 + $0x3ec] ss:$16 sps:$4 sm:$0xff]  }
  0xaa   :  { %1950 = vmatprep.mubr.bf16.mxu1 %v4010_v3  ;;  %v3612_v3 = vld [vmem:[#allocation2 + $0x288] ss:$16 sps:$4 sm:$0xff]  }
  0xab   :  { %1921 = vmatpush1.bf16.msra.mxu1 %v3594_v37  ;;  %v3684_v37 = vld [vmem:[#allocation2 + $0x40c] ss:$16 sps:$4 sm:$0xff]  }
  0xac   :  { %1839 = vmatpush1.bf16.msra.mxu0 %v3591_v36  ;;  %1922 = vmatprep.subr.bf16.mxu1 %v3602_v39  ;;  %v3678_v36 = vld [vmem:[#allocation2 + $0x3e8] ss:$16 sps:$4 sm:$0xff]   ;;  %v4052_v39 = vpack.c.bf16 %v4036_v24, %v4036_v24  ;;  %v3783_v24 = vld [vmem:[%s4432_s3 + $0x14] ss:$8 sps:$4 sm:$0xff]  }
  0xad   :  { %1840 = vmatprep.subr.bf16.mxu0 %v3599_v38  ;;  %v3682_v38 = vld [vmem:[#allocation2 + $0x408] ss:$16 sps:$4 sm:$0xff]  }
  0xaf   :  { %1923 = vmatpush1.bf16.msra.mxu1 %v3600_v41  ;;  %v3778_v41 = vld [vmem:[%s4432_s3] ss:$8 sps:$4 sm:$0xff]  }
  0xb0   :  { %1841 = vmatpush1.bf16.msra.mxu0 %v3597_v40  ;;  %1924 = vmatprep.subr.bf16.mxu1 %v3608_v16  ;;  %v3687_v40 = vld [vmem:[#allocation2 + $0x42c] ss:$16 sps:$4 sm:$0xff]   ;;  %v3685_v16 = vld [vmem:[#allocation2 + $0x428] ss:$16 sps:$4 sm:$0xff]  }
  0xb1   :  { %1842 = vmatprep.subr.bf16.mxu0 %v3605_v42  ;;  %v3780_v42 = vld [vmem:[%s4432_s3 + $0x4] ss:$8 sps:$4 sm:$0xff]  }
  0xb3   :  { %1925 = vmatpush1.bf16.msra.mxu1 %v3606_v45  ;;  %v3786_v45 = vld [vmem:[%s4432_s3 + $0x24] ss:$8 sps:$4 sm:$0xff]  }
  0xb4   :  { %1843 = vmatpush1.bf16.msra.mxu0 %v3603_v44  ;;  %1926 = vmatprep.subr.bf16.mxu1 %v3614_v47  ;;  %v3690_v44 = vld [vmem:[#allocation2 + $0x44c] ss:$16 sps:$4 sm:$0xff]   ;;  %v3784_v47 = vld [vmem:[%s4432_s3 + $0x20] ss:$8 sps:$4 sm:$0xff]  }
  0xb5   :  { %1844 = vmatprep.subr.bf16.mxu0 %v3611_v46  ;;  %v3688_v46 = vld [vmem:[#allocation2 + $0x448] ss:$16 sps:$4 sm:$0xff]  }
  0xb7   :  { %1927 = vmatpush1.bf16.msra.mxu1 %v3612_v3  ;;  %v3691_v3 = vld [vmem:[#allocation2 + $0x468] ss:$16 sps:$4 sm:$0xff]  }
  0xb8   :  { %1845 = vmatpush1.bf16.msra.mxu0 %v3609_v48  ;;  %1928 = vmatprep.subr.bf16.mxu1 %v3620_v52  ;;  %v3789_v48 = vld [vmem:[%s4432_s3 + $0x34] ss:$8 sps:$4 sm:$0xff]   ;;  %v3787_v52 = vld [vmem:[%s4432_s3 + $0x30] ss:$8 sps:$4 sm:$0xff]  }
  0xb9   :  { %1846 = vmatprep.subr.bf16.mxu0 %v3617_v50  ;;  %v3696_v50 = vld [vmem:[#allocation2 + $0x48c] ss:$16 sps:$4 sm:$0xff]  }
  0xbb   :  { %1929 = vmatpush1.bf16.msra.mxu1 %v3618_v54  ;;  %v3694_v54 = vld [vmem:[#allocation2 + $0x488] ss:$16 sps:$4 sm:$0xff]  }
  0xbc   :  { %1847 = vmatpush1.bf16.msra.mxu0 %v3615_v53  ;;  %1930 = vmatprep.subr.bf16.mxu1 %v3626_v56  ;;  %v3792_v53 = vld [vmem:[%s4432_s3 + $0x44] ss:$8 sps:$4 sm:$0xff]   ;;  %v3790_v56 = vld [vmem:[%s4432_s3 + $0x40] ss:$8 sps:$4 sm:$0xff]  }
  0xbd   :  { %1848 = vmatprep.subr.bf16.mxu0 %v3623_v55  ;;  %v3699_v55 = vld [vmem:[#allocation2 + $0x4ac] ss:$16 sps:$4 sm:$0xff]  }
  0xbf   :  { %1931 = vmatpush1.bf16.msra.mxu1 %v3624_v58  ;;  %v3697_v58 = vld [vmem:[#allocation2 + $0x4a8] ss:$16 sps:$4 sm:$0xff]  }
  0xc0   :  { %1849 = vmatpush1.bf16.msra.mxu0 %v3621_v57  ;;  %1932 = vmatprep.subr.bf16.mxu1 %v3632_v60  ;;  %v3795_v57 = vld [vmem:[%s4432_s3 + $0x54] ss:$8 sps:$4 sm:$0xff]   ;;  %v3793_v60 = vld [vmem:[%s4432_s3 + $0x50] ss:$8 sps:$4 sm:$0xff]  }
  0xc1   :  { %1850 = vmatprep.subr.bf16.mxu0 %v3629_v59  ;;  %v3702_v59 = vld [vmem:[#allocation2 + $0x4cc] ss:$16 sps:$4 sm:$0xff]  }
  0xc3   :  { %1933 = vmatpush1.bf16.msra.mxu1 %v3630_v62  ;;  %v3700_v62 = vld [vmem:[#allocation2 + $0x4c8] ss:$16 sps:$4 sm:$0xff]  }
  0xc4   :  { %1851 = vmatpush1.bf16.msra.mxu0 %v3627_v61  ;;  %1934 = vmatprep.subr.bf16.mxu1 %v3638_v0  ;;  %v3798_v61 = vld [vmem:[%s4432_s3 + $0x64] ss:$8 sps:$4 sm:$0xff]   ;;  %v3796_v0 = vld [vmem:[%s4432_s3 + $0x60] ss:$8 sps:$4 sm:$0xff]  }
  0xc5   :  { %1852 = vmatprep.subr.bf16.mxu0 %v3635_v63  ;;  %v3705_v63 = vld [vmem:[#allocation2 + $0x4ec] ss:$16 sps:$4 sm:$0xff]  }
  0xc7   :  { %1935 = vmatpush1.bf16.msra.mxu1 %v3636_v2  ;;  %v3703_v2 = vld [vmem:[#allocation2 + $0x4e8] ss:$16 sps:$4 sm:$0xff]  }
  0xc8   :  { %1853 = vmatpush1.bf16.msra.mxu0 %v3633_v1  ;;  %1936 = vmatprep.subr.bf16.mxu1 %v3644_v5  ;;  %v3801_v1 = vld [vmem:[%s4432_s3 + $0x74] ss:$8 sps:$4 sm:$0xff]   ;;  %v3799_v5 = vld [vmem:[%s4432_s3 + $0x70] ss:$8 sps:$4 sm:$0xff]  }
  0xc9   :  { %1854 = vmatprep.subr.bf16.mxu0 %v3641_v4  ;;  %v3708_v4 = vld [vmem:[#allocation2 + $0x50c] ss:$16 sps:$4 sm:$0xff]  }
  0xcb   :  { %1937 = vmatpush1.bf16.msra.mxu1 %v3642_v7  ;;  %v3706_v7 = vld [vmem:[#allocation2 + $0x508] ss:$16 sps:$4 sm:$0xff]  }
  0xcc   :  { %1855 = vmatpush1.bf16.msra.mxu0 %v3639_v6  ;;  %1938 = vmatprep.subr.bf16.mxu1 %v3650_v9  ;;  %v3804_v6 = vld [vmem:[%s4432_s3 + $0x84] ss:$8 sps:$4 sm:$0xff]   ;;  %v3802_v9 = vld [vmem:[%s4432_s3 + $0x80] ss:$8 sps:$4 sm:$0xff]  }
  0xcd   :  { %1856 = vmatprep.subr.bf16.mxu0 %v3647_v8  ;;  %v3711_v8 = vld [vmem:[#allocation2 + $0x52c] ss:$16 sps:$4 sm:$0xff]  }
  0xcf   :  { %1939 = vmatpush1.bf16.msra.mxu1 %v3648_v11  ;;  %v3709_v11 = vld [vmem:[#allocation2 + $0x528] ss:$16 sps:$4 sm:$0xff]  }
  0xd0   :  { %1857 = vmatpush1.bf16.msra.mxu0 %v3645_v10  ;;  %1940 = vmatprep.subr.bf16.mxu1 %v3656_v13  ;;  %v3807_v10 = vld [vmem:[%s4432_s3 + $0x94] ss:$8 sps:$4 sm:$0xff]   ;;  %v3805_v13 = vld [vmem:[%s4432_s3 + $0x90] ss:$8 sps:$4 sm:$0xff]  }
  0xd1   :  { %1858 = vmatprep.subr.bf16.mxu0 %v3653_v12  ;;  %v3714_v12 = vld [vmem:[#allocation2 + $0x54c] ss:$16 sps:$4 sm:$0xff]  }
  0xd3   :  { %1941 = vmatpush1.bf16.msra.mxu1 %v3654_v15  ;;  %v3712_v15 = vld [vmem:[#allocation2 + $0x548] ss:$16 sps:$4 sm:$0xff]  }
  0xd4   :  { %1859 = vmatpush1.bf16.msra.mxu0 %v3651_v14  ;;  %1942 = vmatprep.subr.bf16.mxu1 %v3662_v19  ;;  %v3810_v14 = vld [vmem:[%s4432_s3 + $0xa4] ss:$8 sps:$4 sm:$0xff]   ;;  %v3808_v19 = vld [vmem:[%s4432_s3 + $0xa0] ss:$8 sps:$4 sm:$0xff]  }
  0xd5   :  { %1860 = vmatprep.subr.bf16.mxu0 %v3659_v17  ;;  %v3717_v17 = vld [vmem:[#allocation2 + $0x56c] ss:$16 sps:$4 sm:$0xff]  }
  0xd7   :  { %1943 = vmatpush1.bf16.msra.mxu1 %v3660_v21  ;;  %v3715_v21 = vld [vmem:[#allocation2 + $0x568] ss:$16 sps:$4 sm:$0xff]  }
  0xd8   :  { %1861 = vmatpush1.bf16.msra.mxu0 %v3657_v20  ;;  %1944 = vmatprep.subr.bf16.mxu1 %v3668_v23  ;;  %v3813_v20 = vld [vmem:[%s4432_s3 + $0xb4] ss:$8 sps:$4 sm:$0xff]   ;;  %v3811_v23 = vld [vmem:[%s4432_s3 + $0xb0] ss:$8 sps:$4 sm:$0xff]  }
  0xd9   :  { %1862 = vmatprep.subr.bf16.mxu0 %v3665_v22  ;;  %v3720_v22 = vld [vmem:[#allocation2 + $0x58c] ss:$16 sps:$4 sm:$0xff]  }
  0xdb   :  { %1945 = vmatpush1.bf16.msra.mxu1 %v3666_v26  ;;  %v3718_v26 = vld [vmem:[#allocation2 + $0x588] ss:$16 sps:$4 sm:$0xff]  }
  0xdc   :  { %1863 = vmatpush1.bf16.msra.mxu0 %v3663_v25  ;;  %1946 = vmatprep.subr.bf16.mxu1 %v3674_v28  ;;  %v3816_v25 = vld [vmem:[%s4432_s3 + $0xc4] ss:$8 sps:$4 sm:$0xff]   ;;  %v3814_v28 = vld [vmem:[%s4432_s3 + $0xc0] ss:$8 sps:$4 sm:$0xff]  }
  0xdd   :  { %1864 = vmatprep.subr.bf16.mxu0 %v3671_v27  ;;  %v3723_v27 = vld [vmem:[#allocation2 + $0x5ac] ss:$16 sps:$4 sm:$0xff]  }
  0xdf   :  { %1947 = vmatpush1.bf16.msra.mxu1 %v3672_v31  ;;  %v3721_v31 = vld [vmem:[#allocation2 + $0x5a8] ss:$16 sps:$4 sm:$0xff]  }
  0xe0   :  { %1865 = vmatpush1.bf16.msra.mxu0 %v3669_v29  ;;  %1948 = vmatprep.subr.bf16.mxu1 %v3680_v33  ;;  %v3819_v29 = vld [vmem:[%s4432_s3 + $0xd4] ss:$8 sps:$4 sm:$0xff]   ;;  %v3817_v33 = vld [vmem:[%s4432_s3 + $0xd0] ss:$8 sps:$4 sm:$0xff]  }
  0xe1   :  { %1866 = vmatprep.subr.bf16.mxu0 %v3677_v32  ;;  %v3726_v32 = vld [vmem:[#allocation2 + $0x5cc] ss:$16 sps:$4 sm:$0xff]  }
  0xe3   :  { %1949 = vmatpush1.bf16.msra.mxu1 %v3678_v36  ;;  %v3729_v36 = vld [vmem:[#allocation2 + $0x5ec] ss:$16 sps:$4 sm:$0xff]  }
  0xe4   :  { %1867 = vmatpush1.bf16.msra.mxu0 %v3675_v34  ;;  %1959 = vmatprep.subr.bf16.mxu1 %v3684_v37  ;;  %v3724_v34 = vld [vmem:[#allocation2 + $0x5c8] ss:$16 sps:$4 sm:$0xff]  }
  0xe5   :  { %2444 = vmatprep.subr.bf16.mxu0 %v3780_v42  ;;  %v3727_v37 = vld [vmem:[#allocation2 + $0x5e8] ss:$16 sps:$4 sm:$0xff]  }
  0xe6   :  { %1951 = vmatmul.mubr.bf16.vlgmr.msra.gmra.mrb[4].mxu1 %v4015_v18  ;;  %v3781_v18 = vld [vmem:[%s4432_s3 + $0x10] ss:$8 sps:$4 sm:$0xff]  }
  0xe7   :  { %1869 = vmatmul.mubr.bf16.vlgmr.msra.gmra.mrb[0].mxu0 %v4052_v39  ;;  %1960 = vmatpush1.bf16.msra.mxu1 %v3682_v38  ;;  %v3732_v38 = vld [vmem:[#allocation2 + $0x60c] ss:$16 sps:$4 sm:$0xff]   ;;  %v3733_v42 = vld [vmem:[#allocation2 + $0x628] ss:$16 sps:$4 sm:$0xff]  }
  0xe8   :  { %1991 = vmatprep.mubr.bf16.mxu1 %v4030_v51  ;;  %1961 = vmatprep.subr.bf16.mxu1 %v3687_v40  ;;  %v3693_v51 = vld [vmem:[#allocation2 + $0x46c] ss:$16 sps:$4 sm:$0xff]   ;;  %v3730_v40 = vld [vmem:[#allocation2 + $0x608] ss:$16 sps:$4 sm:$0xff]  }
  0xe9   :  { %2445 = vmatpush1.bf16.msra.mxu0 %v3778_v41  ;;  %v3735_v41 = vld [vmem:[#allocation2 + $0x62c] ss:$16 sps:$4 sm:$0xff]  }
  0xea   :  { %2446 = vmatprep.subr.bf16.mxu0 %v3783_v24  ;;  %v3736_v24 = vld [vmem:[#allocation2 + $0x648] ss:$16 sps:$4 sm:$0xff]  }
  0xeb   :  { %1962 = vmatpush1.bf16.msra.mxu1 %v3685_v16  ;;  %v3738_v16 = vld [vmem:[#allocation2 + $0x64c] ss:$16 sps:$4 sm:$0xff]  }
  0xec   :  { %1963 = vmatprep.subr.bf16.mxu1 %v3690_v44  ;;  %v3741_v44 = vld [vmem:[#allocation2 + $0x66c] ss:$16 sps:$4 sm:$0xff]  }
  0xed   :  { %2447 = vmatpush1.bf16.msra.mxu0 %v3781_v18  ;;  %v3739_v18 = vld [vmem:[#allocation2 + $0x668] ss:$16 sps:$4 sm:$0xff]  }
  0xee   :  { %2448 = vmatprep.subr.bf16.mxu0 %v3786_v45  ;;  %v3744_v45 = vld [vmem:[#allocation2 + $0x68c] ss:$16 sps:$4 sm:$0xff]  }
  0xef   :  { %1964 = vmatpush1.bf16.msra.mxu1 %v3688_v46  ;;  %v3742_v46 = vld [vmem:[#allocation2 + $0x688] ss:$16 sps:$4 sm:$0xff]  }
  0xf0   :  { %1965 = vmatprep.subr.bf16.mxu1 %v3693_v51  ;;  %v3747_v51 = vld [vmem:[#allocation2 + $0x6ac] ss:$16 sps:$4 sm:$0xff]  }
  0xf1   :  { %2449 = vmatpush1.bf16.msra.mxu0 %v3784_v47  ;;  %v3750_v47 = vld [vmem:[#allocation2 + $0x6cc] ss:$16 sps:$4 sm:$0xff]  }
  0xf2   :  { %2450 = vmatprep.subr.bf16.mxu0 %v3789_v48 }
  0xf3   :  { %1966 = vmatpush1.bf16.msra.mxu1 %v3691_v3  ;;  %v3820_v3 = vld [vmem:[%s4432_s3 + $0xe0] ss:$8 sps:$4 sm:$0xff]  }
  0xf4   :  { %1967 = vmatprep.subr.bf16.mxu1 %v3696_v50 }
  0xf5   :  { %2451 = vmatpush1.bf16.msra.mxu0 %v3787_v52 }
  0xf6   :  { %2452 = vmatprep.subr.bf16.mxu0 %v3792_v53  ;;  %v3748_v53 = vld [vmem:[#allocation2 + $0x6c8] ss:$16 sps:$4 sm:$0xff]  }
  0xf7   :  { %1968 = vmatpush1.bf16.msra.mxu1 %v3694_v54 }
  0xf8   :  { %1969 = vmatprep.subr.bf16.mxu1 %v3699_v55  ;;  %v3753_v55 = vld [vmem:[#allocation2 + $0x6ec] ss:$16 sps:$4 sm:$0xff]  }
  0xf9   :  { %2453 = vmatpush1.bf16.msra.mxu0 %v3790_v56  ;;  %v3825_v56 = vld [vmem:[%s4432_s3 + $0xf4] ss:$8 sps:$4 sm:$0xff]  }
  0xfa   :  { %2454 = vmatprep.subr.bf16.mxu0 %v3795_v57  ;;  %v3823_v57 = vld [vmem:[%s4432_s3 + $0xf0] ss:$8 sps:$4 sm:$0xff]  }
  0xfb   :  { %1970 = vmatpush1.bf16.msra.mxu1 %v3697_v58  ;;  %v3751_v58 = vld [vmem:[#allocation2 + $0x6e8] ss:$16 sps:$4 sm:$0xff]  }
  0xfc   :  { %1971 = vmatprep.subr.bf16.mxu1 %v3702_v59  ;;  %v3756_v59 = vld [vmem:[#allocation2 + $0x70c] ss:$16 sps:$4 sm:$0xff]  }
  0xfd   :  { %2455 = vmatpush1.bf16.msra.mxu0 %v3793_v60  ;;  %v3828_v60 = vld [vmem:[%s4432_s3 + $0x104] ss:$8 sps:$4 sm:$0xff]  }
  0xfe   :  { %2456 = vmatprep.subr.bf16.mxu0 %v3798_v61  ;;  %v3754_v61 = vld [vmem:[#allocation2 + $0x708] ss:$16 sps:$4 sm:$0xff]  }
  0xff   :  { %1972 = vmatpush1.bf16.msra.mxu1 %v3700_v62  ;;  %v3759_v62 = vld [vmem:[#allocation2 + $0x72c] ss:$16 sps:$4 sm:$0xff]  }
 0x100   :  { %1973 = vmatprep.subr.bf16.mxu1 %v3705_v63  ;;  %v3757_v63 = vld [vmem:[#allocation2 + $0x728] ss:$16 sps:$4 sm:$0xff]  }
 0x101   :  { %2457 = vmatpush1.bf16.msra.mxu0 %v3796_v0  ;;  %v3762_v0 = vld [vmem:[#allocation2 + $0x74c] ss:$16 sps:$4 sm:$0xff]  }
 0x102   :  { %2458 = vmatprep.subr.bf16.mxu0 %v3801_v1  ;;  %v3760_v1 = vld [vmem:[#allocation2 + $0x748] ss:$16 sps:$4 sm:$0xff]  }
 0x103   :  { %1974 = vmatpush1.bf16.msra.mxu1 %v3703_v2  ;;  %v3765_v2 = vld [vmem:[#allocation2 + $0x76c] ss:$16 sps:$4 sm:$0xff]  }
 0x104   :  { %1975 = vmatprep.subr.bf16.mxu1 %v3708_v4  ;;  %v3763_v4 = vld [vmem:[#allocation2 + $0x768] ss:$16 sps:$4 sm:$0xff]  }
 0x105   :  { %2459 = vmatpush1.bf16.msra.mxu0 %v3799_v5  ;;  %v3768_v5 = vld [vmem:[#allocation2 + $0x78c] ss:$16 sps:$4 sm:$0xff]  }
 0x106   :  { %2460 = vmatprep.subr.bf16.mxu0 %v3804_v6  ;;  %v3766_v6 = vld [vmem:[#allocation2 + $0x788] ss:$16 sps:$4 sm:$0xff]  }
 0x107   :  { %1976 = vmatpush1.bf16.msra.mxu1 %v3706_v7  ;;  %v3771_v7 = vld [vmem:[#allocation2 + $0x7ac] ss:$16 sps:$4 sm:$0xff]  }
 0x108   :  { %1977 = vmatprep.subr.bf16.mxu1 %v3711_v8  ;;  %v3769_v8 = vld [vmem:[#allocation2 + $0x7a8] ss:$16 sps:$4 sm:$0xff]  }
 0x109   :  { %2461 = vmatpush1.bf16.msra.mxu0 %v3802_v9  ;;  %v3774_v9 = vld [vmem:[#allocation2 + $0x7cc] ss:$16 sps:$4 sm:$0xff]  }
 0x10a   :  { %2462 = vmatprep.subr.bf16.mxu0 %v3807_v10  ;;  %v3772_v10 = vld [vmem:[#allocation2 + $0x7c8] ss:$16 sps:$4 sm:$0xff]  }
 0x10b   :  { %1978 = vmatpush1.bf16.msra.mxu1 %v3709_v11  ;;  %v3777_v11 = vld [vmem:[#allocation2 + $0x7ec] ss:$16 sps:$4 sm:$0xff]  }
 0x10c   :  { %1979 = vmatprep.subr.bf16.mxu1 %v3714_v12  ;;  %v3775_v12 = vld [vmem:[#allocation2 + $0x7e8] ss:$16 sps:$4 sm:$0xff]  }
 0x10d   :  { %2463 = vmatpush1.bf16.msra.mxu0 %v3805_v13  ;;  %v415_v13 = vsub.s32 0, %v4000_v43 }
 0x10e   :  { %2464 = vmatprep.subr.bf16.mxu0 %v3810_v14  ;;  %v4160_v14 = vld [vmem:[#allocation4] ss:$8 sm:$0xf] }
 0x10f   :  { %1980 = vmatpush1.bf16.msra.mxu1 %v3712_v15  ;;  %v419_v15 = vsub.s32 1, %v4000_v43 }
 0x110   :  { %1981 = vmatprep.subr.bf16.mxu1 %v3717_v17  ;;  %v416_v17 = vrot.slane %v4160_v14, %v415_v13 }
 0x111   :  { %2465 = vmatpush1.bf16.msra.mxu0 %v3808_v19  ;;  %v420_v19 = vrot.slane %v4160_v14, %v419_v15 }
 0x112   :  { %2466 = vmatprep.subr.bf16.mxu0 %v3813_v20 }
 0x113   :  { %1982 = vmatpush1.bf16.msra.mxu1 %v3715_v21 }
 0x114   :  { %1983 = vmatprep.subr.bf16.mxu1 %v3720_v22 }
 0x115   :  { %2467 = vmatpush1.bf16.msra.mxu0 %v3811_v23 }
 0x116   :  { %2468 = vmatprep.subr.bf16.mxu0 %v3816_v25 }
 0x117   :  { %1984 = vmatpush1.bf16.msra.mxu1 %v3718_v26 }
 0x118   :  { %1985 = vmatprep.subr.bf16.mxu1 %v3723_v27 }
 0x119   :  { %2469 = vmatpush1.bf16.msra.mxu0 %v3814_v28 }
 0x11a   :  { %2470 = vmatprep.subr.bf16.mxu0 %v3819_v29 }
 0x11b   :  { %1986 = vmatpush1.bf16.msra.mxu1 %v3721_v31 }
 0x11c   :  { %1987 = vmatprep.subr.bf16.mxu1 %v3726_v32  ;;  %v3826_v32 = vld [vmem:[%s4432_s3 + $0x100] ss:$8 sps:$4 sm:$0xff]  }
 0x11d   :  { %2471 = vmatpush1.bf16.msra.mxu0 %v3817_v33 }
 0x11f   :  { %1988 = vmatpush1.bf16.msra.mxu1 %v3724_v34  ;;  %v3831_v34 = vld [vmem:[%s4432_s3 + $0x114] ss:$8 sps:$4 sm:$0xff]  }
 0x120   :  { %1989 = vmatprep.subr.bf16.mxu1 %v3729_v36  ;;  %v3829_v36 = vld [vmem:[%s4432_s3 + $0x110] ss:$8 sps:$4 sm:$0xff]  }
 0x123   :  { %1990 = vmatpush1.bf16.msra.mxu1 %v3727_v37  ;;  %v3834_v37 = vld [vmem:[%s4432_s3 + $0x124] ss:$8 sps:$4 sm:$0xff]  }
 0x124   :  { %2000 = vmatprep.subr.bf16.mxu1 %v3732_v38  ;;  %v3832_v38 = vld [vmem:[%s4432_s3 + $0x120] ss:$8 sps:$4 sm:$0xff]  }
 0x126   :  { %1992 = vmatmul.mubr.bf16.vlgmr.msra.gmra.mrb[4].mxu1 %v4042_v30  ;;  %v3745_v30 = vld [vmem:[#allocation2 + $0x6a8] ss:$16 sps:$4 sm:$0xff]  }
 0x127   :  { %2001 = vmatpush1.bf16.msra.mxu1 %v3730_v40  ;;  %2032 = vmatprep.mubr.bf16.mxu1 %v4044_v35  ;;  %v3822_v35 = vld [vmem:[%s4432_s3 + $0xe4] ss:$8 sps:$4 sm:$0xff]   ;;  %v3837_v40 = vld [vmem:[%s4432_s3 + $0x134] ss:$8 sps:$4 sm:$0xff]  }
 0x128   :  { %2002 = vmatprep.subr.bf16.mxu1 %v3735_v41  ;;  %2472 = vmatprep.subr.bf16.mxu0 %v3822_v35  ;;  %v3835_v41 = vld [vmem:[%s4432_s3 + $0x130] ss:$8 sps:$4 sm:$0xff]   ;;  %v3855_v35 = vld [vmem:[%s4432_s3 + $0x194] ss:$8 sps:$4 sm:$0xff]  }
 0x129   :  { %2473 = vmatpush1.bf16.msra.mxu0 %v3820_v3  ;;  %v3858_v3 = vld [vmem:[%s4432_s3 + $0x1a4] ss:$8 sps:$4 sm:$0xff]  }
 0x12a   :  { %2474 = vmatprep.subr.bf16.mxu0 %v3825_v56  ;;  %v3867_v56 = vld [vmem:[%s4432_s3 + $0x1d4] ss:$8 sps:$4 sm:$0xff]  }
 0x12b   :  { %2003 = vmatpush1.bf16.msra.mxu1 %v3733_v42  ;;  %v3840_v42 = vld [vmem:[%s4432_s3 + $0x144] ss:$8 sps:$4 sm:$0xff]  }
 0x12c   :  { %2004 = vmatprep.subr.bf16.mxu1 %v3738_v16  ;;  %v3838_v16 = vld [vmem:[%s4432_s3 + $0x140] ss:$8 sps:$4 sm:$0xff]  }
 0x12d   :  { %2475 = vmatpush1.bf16.msra.mxu0 %v3823_v57  ;;  %v3865_v57 = vld [vmem:[%s4432_s3 + $0x1d0] ss:$8 sps:$4 sm:$0xff]  }
 0x12e   :  { %2485 = vmatprep.subr.bf16.mxu0 %v3828_v60  ;;  %v3873_v60 = vld [vmem:[%s4432_s3 + $0x1f4] ss:$8 sps:$4 sm:$0xff]  }
 0x12f   :  { %2005 = vmatpush1.bf16.msra.mxu1 %v3736_v24  ;;  %v3843_v24 = vld [vmem:[%s4432_s3 + $0x154] ss:$8 sps:$4 sm:$0xff]  }
 0x130   :  { %2006 = vmatprep.subr.bf16.mxu1 %v3741_v44  ;;  %v3841_v44 = vld [vmem:[%s4432_s3 + $0x150] ss:$8 sps:$4 sm:$0xff]  }
 0x133   :  { %2007 = vmatpush1.bf16.msra.mxu1 %v3739_v18  ;;  %v3846_v18 = vld [vmem:[%s4432_s3 + $0x164] ss:$8 sps:$4 sm:$0xff]  }
 0x134   :  { %2008 = vmatprep.subr.bf16.mxu1 %v3744_v45  ;;  %v3844_v45 = vld [vmem:[%s4432_s3 + $0x160] ss:$8 sps:$4 sm:$0xff]  }
 0x137   :  { %2009 = vmatpush1.bf16.msra.mxu1 %v3742_v46  ;;  %v3849_v46 = vld [vmem:[%s4432_s3 + $0x174] ss:$8 sps:$4 sm:$0xff]  }
 0x138   :  { %2010 = vmatprep.subr.bf16.mxu1 %v3747_v51  ;;  %v3847_v51 = vld [vmem:[%s4432_s3 + $0x170] ss:$8 sps:$4 sm:$0xff]  }
 0x139   :  { %v1747_v48 = vpop.f32.mrb[0].mxu1 }
 0x13a   :  { %v1749_v50 = vpop.f32.mrb[1].mxu1  ;;  %v1748_v20 = vadd.f32 %v1747_v48, %v416_v17  ;;  %v3853_v48 = vld [vmem:[%s4432_s3 + $0x190] ss:$8 sps:$4 sm:$0xff]   ;;  %v58_v17 = vld [vmem:[%s4434_s5] sm:$0xff] }
 0x13b   :  { %v1751_v52 = vpop.f32.mrb[2].mxu1  ;;  %2011 = vmatpush1.bf16.msra.mxu1 %v3745_v30  ;;  %v1750_v21 = vadd.f32 %v1749_v50, %v420_v19  ;;  %v3852_v30 = vld [vmem:[%s4432_s3 + $0x184] ss:$8 sps:$4 sm:$0xff]   ;;  %v3856_v50 = vld [vmem:[%s4432_s3 + $0x1a0] ss:$8 sps:$4 sm:$0xff]  }
 0x13c   :  { %v1752_v54 = vpop.f32.mrb[3].mxu1  ;;  %2012 = vmatprep.subr.bf16.mxu1 %v3750_v47  ;;  %v3850_v47 = vld [vmem:[%s4432_s3 + $0x180] ss:$8 sps:$4 sm:$0xff]   ;;  %v3861_v52 = vld [vmem:[%s4432_s3 + $0x1b4] ss:$8 sps:$4 sm:$0xff]  }
 0x13d   :  { %v3864_v54 = vld [vmem:[%s4432_s3 + $0x1c4] ss:$8 sps:$4 sm:$0xff]  }
 0x13e   :  { %v59_v19 = vld [vmem:[%s4434_s5 + $0x8] sm:$0xff] }
 0x13f   :  { %2013 = vmatpush1.bf16.msra.mxu1 %v3748_v53  ;;  %v3859_v53 = vld [vmem:[%s4432_s3 + $0x1b0] ss:$8 sps:$4 sm:$0xff]  }
 0x140   :  { %2014 = vmatprep.subr.bf16.mxu1 %v3753_v55  ;;  %v3862_v55 = vld [vmem:[%s4432_s3 + $0x1c0] ss:$8 sps:$4 sm:$0xff]  }
 0x143   :  { %2015 = vmatpush1.bf16.msra.mxu1 %v3751_v58  ;;  %v3870_v58 = vld [vmem:[%s4432_s3 + $0x1e4] ss:$8 sps:$4 sm:$0xff]  }
 0x144   :  { %2016 = vmatprep.subr.bf16.mxu1 %v3756_v59  ;;  %v3868_v59 = vld [vmem:[%s4432_s3 + $0x1e0] ss:$8 sps:$4 sm:$0xff]  }
 0x147   :  { %2017 = vmatpush1.bf16.msra.mxu1 %v3754_v61  ;;  %v74_v61 = vld [vmem:[%s4434_s5 + $0x80] sm:$0xff] }
 0x148   :  { %2018 = vmatprep.subr.bf16.mxu1 %v3759_v62  ;;  %v75_v62 = vld [vmem:[%s4434_s5 + $0x88] sm:$0xff] }
 0x14b   :  { %2019 = vmatpush1.bf16.msra.mxu1 %v3757_v63  ;;  %v3871_v63 = vld [vmem:[%s4432_s3 + $0x1f0] ss:$8 sps:$4 sm:$0xff]  }
 0x14c   :  { %2020 = vmatprep.subr.bf16.mxu1 %v3762_v0  ;;  %v3301_v0 = vpack.c.bf16 %v75_v62, %v74_v61  ;;  %v72_v61 = vld [vmem:[%s4434_s5 + $0x70] sm:$0xff]  ;;  %v73_v62 = vld [vmem:[%s4434_s5 + $0x78] sm:$0xff] }
 0x14f   :  { %2021 = vmatpush1.bf16.msra.mxu1 %v3760_v1  ;;  %v423_v1 = vsub.s32 2, %v4000_v43 }
 0x150   :  { %2022 = vmatprep.subr.bf16.mxu1 %v3765_v2  ;;  %v427_v2 = vsub.s32 3, %v4000_v43 }
 0x153   :  { %2023 = vmatpush1.bf16.msra.mxu1 %v3763_v4  ;;  %v424_v4 = vrot.slane %v4160_v14, %v423_v1 }
 0x154   :  { %2024 = vmatprep.subr.bf16.mxu1 %v3768_v5  ;;  %v428_v5 = vrot.slane %v4160_v14, %v427_v2  ;;  %v76_v14 = vld [vmem:[%s4434_s5 + $0x90] sm:$0xff] }
 0x157   :  { %2025 = vmatpush1.bf16.msra.mxu1 %v3766_v6 }
 0x158   :  { %2026 = vmatprep.subr.bf16.mxu1 %v3771_v7 }
 0x15b   :  { %2027 = vmatpush1.bf16.msra.mxu1 %v3769_v8 }
 0x15c   :  { %2028 = vmatprep.subr.bf16.mxu1 %v3774_v9 }
 0x15f   :  { %2029 = vmatpush1.bf16.msra.mxu1 %v3772_v10 }
 0x160   :  { %2030 = vmatprep.subr.bf16.mxu1 %v3777_v11 }
 0x163   :  { %2031 = vmatpush1.bf16.msra.mxu1 %v3775_v12 }
 0x166   :  { %2033 = vmatmul.mubr.bf16.vlgmr.msra.gmra.mrb[4].mxu1 %v4052_v39 }
 0x1ba   :  { %v1870_v22 = vpop.f32.mrb[0].mxu0 }
 0x1bb   :  { %v3352_v23 = vadd.f32 %v1870_v22, %v1748_v20  ;;  %v1872_v25 = vpop.f32.mrb[1].mxu0 }
 0x1bc   :  { %v3354_v39 = vadd.f32 %v1872_v25, %v1750_v21  ;;  %v1874_v26 = vpop.f32.mrb[2].mxu0  ;;  %v77_v21 = vld [vmem:[%s4434_s5 + $0x98] sm:$0xff] }
 0x1bd   :  { %v2041_v27 = vmax.f32 %v3352_v23, 0.0  ;;  %v1875_v28 = vpop.f32.mrb[3].mxu0  ;;  %v3303_v23 = vpack.c.bf16 %v59_v19, %v58_v17  ;;  %v60_v26 = vld [vmem:[%s4434_s5 + $0x10] sm:$0xff]  ;;  %v52_v19 = vld [vmem:[#allocation4 + $0x2] ss:$0 sm:$0xff] }
 0x1be   :  { %v2042_v29 = vmax.f32 %v3354_v39, 0.0  ;;  %v3305_v39 = vpack.c.bf16 %v77_v21, %v76_v14  ;;  %v78_v28 = vld [vmem:[%s4434_s5 + $0xa0] sm:$0xff] }
 0x1bf   :  { %v2045_v33 = vpack.c.bf16 %v2041_v27, %v2041_v27  ;;  %v61_v27 = vld [vmem:[%s4434_s5 + $0x18] sm:$0xff] }
 0x1c0   :  { %v2046_v31 = vpack.c.bf16 %v2042_v29, %v2042_v29  ;;  %v79_v29 = vld [vmem:[%s4434_s5 + $0xa8] sm:$0xff] }
 0x1c2   :  { %2476 = vmatprep.mubr.bf16.mxu0 %v2046_v31  ;;  %v3307_v31 = vpack.c.bf16 %v61_v27, %v60_v26  ;;  %v3937_v27 = vmov 0.0|0.0  }
 0x1c3   :  { %2477 = vmatmul.mubr.bf16.vlgmr.msra.gmra.mrb[4].mxu0 %v2045_v33  ;;  %v62_v33 = vld [vmem:[%s4434_s5 + $0x20] sm:$0xff]  ;;  %3333 = vmatprep.subr.bf16.mxu1 %v3937_v27 }
 0x1c4   :  { %2486 = vmatpush1.bf16.msra.mxu0 %v3826_v32  ;;  %v3309_v32 = vpack.c.bf16 %v79_v29, %v78_v28  ;;  %v92_v28 = vld [vmem:[%s4434_s5 + $0x110] sm:$0xff]  ;;  %v93_v29 = vld [vmem:[%s4434_s5 + $0x118] sm:$0xff] }
 0x1c5   :  { %2487 = vmatprep.subr.bf16.mxu0 %v3831_v34  ;;  %v63_v34 = vld [vmem:[%s4434_s5 + $0x28] sm:$0xff] }
 0x1c8   :  { %2488 = vmatpush1.bf16.msra.mxu0 %v3829_v36  ;;  %v80_v36 = vld [vmem:[%s4434_s5 + $0xb0] sm:$0xff] }
 0x1c9   :  { %2489 = vmatprep.subr.bf16.mxu0 %v3834_v37  ;;  %v81_v37 = vld [vmem:[%s4434_s5 + $0xb8] sm:$0xff] }
 0x1cc   :  { %2490 = vmatpush1.bf16.msra.mxu0 %v3832_v38  ;;  %v3311_v38 = vpack.c.bf16 %v63_v34, %v62_v33 }
 0x1cd   :  { %2491 = vmatprep.subr.bf16.mxu0 %v3837_v40  ;;  %v3313_v40 = vpack.c.bf16 %v81_v37, %v80_v36 }
 0x1d0   :  { %2492 = vmatpush1.bf16.msra.mxu0 %v3835_v41  ;;  %v64_v41 = vld [vmem:[%s4434_s5 + $0x30] sm:$0xff] }
 0x1d1   :  { %2493 = vmatprep.subr.bf16.mxu0 %v3840_v42  ;;  %v65_v42 = vld [vmem:[%s4434_s5 + $0x38] sm:$0xff] }
 0x1d4   :  { %2494 = vmatpush1.bf16.msra.mxu0 %v3838_v16  ;;  %v82_v16 = vld [vmem:[%s4434_s5 + $0xc0] sm:$0xff] }
 0x1d5   :  { %2495 = vmatprep.subr.bf16.mxu0 %v3843_v24  ;;  %v83_v24 = vld [vmem:[%s4434_s5 + $0xc8] sm:$0xff] }
 0x1d8   :  { %2496 = vmatpush1.bf16.msra.mxu0 %v3841_v44  ;;  %v3315_v44 = vpack.c.bf16 %v65_v42, %v64_v41  ;;  %v94_v41 = vld [vmem:[%s4434_s5 + $0x120] sm:$0xff]  ;;  %v95_v42 = vld [vmem:[%s4434_s5 + $0x128] sm:$0xff] }
 0x1d9   :  { %2497 = vmatprep.subr.bf16.mxu0 %v3846_v18  ;;  %v3317_v18 = vpack.c.bf16 %v83_v24, %v82_v16  ;;  %v54_v16 = vld [vmem:[#allocation4 + $0x4] ss:$0 sm:$0xff] }
 0x1dc   :  { %2498 = vmatpush1.bf16.msra.mxu0 %v3844_v45  ;;  %v66_v45 = vld [vmem:[%s4434_s5 + $0x40] sm:$0xff] }
 0x1dd   :  { %2499 = vmatprep.subr.bf16.mxu0 %v3849_v46  ;;  %v67_v46 = vld [vmem:[%s4434_s5 + $0x48] sm:$0xff] }
 0x1e0   :  { %2500 = vmatpush1.bf16.msra.mxu0 %v3847_v51  ;;  %v84_v51 = vld [vmem:[%s4434_s5 + $0xd0] sm:$0xff] }
 0x1e1   :  { %2501 = vmatprep.subr.bf16.mxu0 %v3852_v30  ;;  %v85_v30 = vld [vmem:[%s4434_s5 + $0xd8] sm:$0xff] }
 0x1e4   :  { %2502 = vmatpush1.bf16.msra.mxu0 %v3850_v47  ;;  %v3319_v47 = vpack.c.bf16 %v67_v46, %v66_v45  ;;  %v96_v45 = vld [vmem:[%s4434_s5 + $0x130] sm:$0xff]  ;;  %v97_v46 = vld [vmem:[%s4434_s5 + $0x138] sm:$0xff] }
 0x1e5   :  { %2503 = vmatprep.subr.bf16.mxu0 %v3855_v35  ;;  %v3321_v35 = vpack.c.bf16 %v85_v30, %v84_v51  ;;  %v3343_v51 = vpack.c.bf16 %v97_v46, %v96_v45  ;;  %v55_v30 = vld [vmem:[#allocation4 + $0x5] ss:$0 sm:$0xff] }
 0x1e8   :  { %2504 = vmatpush1.bf16.msra.mxu0 %v3853_v48  ;;  %v68_v48 = vld [vmem:[%s4434_s5 + $0x50] sm:$0xff] }
 0x1e9   :  { %2505 = vmatprep.subr.bf16.mxu0 %v3858_v3  ;;  %v69_v3 = vld [vmem:[%s4434_s5 + $0x58] sm:$0xff] }
 0x1ec   :  { %2506 = vmatpush1.bf16.msra.mxu0 %v3856_v50  ;;  %v86_v50 = vld [vmem:[%s4434_s5 + $0xe0] sm:$0xff] }
 0x1ed   :  { %2507 = vmatprep.subr.bf16.mxu0 %v3861_v52  ;;  %v87_v52 = vld [vmem:[%s4434_s5 + $0xe8] sm:$0xff] }
 0x1f0   :  { %2508 = vmatpush1.bf16.msra.mxu0 %v3859_v53  ;;  %v3323_v53 = vpack.c.bf16 %v69_v3, %v68_v48 }
 0x1f1   :  { %2509 = vmatprep.subr.bf16.mxu0 %v3864_v54  ;;  %v3325_v54 = vpack.c.bf16 %v87_v52, %v86_v50 }
 0x1f4   :  { %2510 = vmatpush1.bf16.msra.mxu0 %v3862_v55  ;;  %v70_v55 = vld [vmem:[%s4434_s5 + $0x60] sm:$0xff] }
 0x1f5   :  { %2511 = vmatprep.subr.bf16.mxu0 %v3867_v56  ;;  %v71_v56 = vld [vmem:[%s4434_s5 + $0x68] sm:$0xff] }
 0x1f8   :  { %2512 = vmatpush1.bf16.msra.mxu0 %v3865_v57  ;;  %v3327_v57 = vpack.c.bf16 %v71_v56, %v70_v55  ;;  %v101_v55 = vld [vmem:[%s4434_s5 + $0x158] sm:$0xff] }
 0x1f9   :  { %2513 = vmatprep.subr.bf16.mxu0 %v3870_v58  ;;  %v88_v58 = vld [vmem:[%s4434_s5 + $0xf0] sm:$0xff] }
 0x1fc   :  { %2514 = vmatpush1.bf16.msra.mxu0 %v3868_v59  ;;  %v89_v59 = vld [vmem:[%s4434_s5 + $0xf8] sm:$0xff] }
 0x1fd   :  { %2515 = vmatprep.subr.bf16.mxu0 %v3873_v60  ;;  %v3329_v60 = vpack.c.bf16 %v89_v59, %v88_v58 }
 0x200   :  { %2516 = vmatpush1.bf16.msra.mxu0 %v3871_v63  ;;  %v3331_v63 = vpack.c.bf16 %v73_v62, %v72_v61  ;;  %v57_v62 = vld [vmem:[#allocation4 + $0x7] ss:$0 sm:$0xff] }
 0x201   :  { %3302 = vmatprep.subr.bf16.mxu0 %v3301_v0  ;;  %v51_v0 = vld [vmem:[#allocation4 + $0x1] ss:$8 sm:$0x3] }
 0x202   :  { %v2117_v1 = vrot.slane %v51_v0, %v415_v13  ;;  %v2121_v2 = vrot.slane %v51_v0, %v419_v15 }
 0x239   :  { %v2034_v6 = vpop.f32.mrb[4].mxu1 }
 0x23a   :  { %v3355_v7 = vadd.f32 %v2034_v6, %v424_v4  ;;  %v2036_v8 = vpop.f32.mrb[5].mxu1 }
 0x23b   :  { %v3356_v9 = vadd.f32 %v2036_v8, %v428_v5  ;;  %v2038_v10 = vpop.f32.mrb[6].mxu1 }
 0x23c   :  { %v2043_v11 = vmax.f32 %v3355_v7, 0.0  ;;  %v2039_v12 = vpop.f32.mrb[7].mxu1 }
 0x23d   :  { %v2044_v20 = vmax.f32 %v3356_v9, 0.0 }
 0x23e   :  { %v2047_v25 = vpack.c.bf16 %v2043_v11, %v2043_v11 }
 0x23f   :  { %v2048_v22 = vpack.c.bf16 %v2044_v20, %v2044_v20 }
 0x241   :  { %2517 = vmatprep.mubr.bf16.mxu0 %v2048_v22 }
 0x242   :  { %2518 = vmatmul.mubr.bf16.vlgmr.msra.gmra.mrb[4].mxu0 %v2047_v25  ;;  %v90_v25 = vld [vmem:[%s4434_s5 + $0x100] sm:$0xff] }
 0x243   :  { %3304 = vmatpush3.bf16.msra.mxu0 %v3303_v23 }
 0x244   :  { %3306 = vmatprep.subr.bf16.mxu0 %v3305_v39  ;;  %v91_v39 = vld [vmem:[%s4434_s5 + $0x108] sm:$0xff] }
 0x245   :  { %v3334_v26 = vpack.c.bf16 %v91_v39, %v90_v25 }
 0x247   :  { %3308 = vmatpush3.bf16.msra.mxu0 %v3307_v31  ;;  %3335 = vmatpush3.bf16.msra.mxu1 %v3334_v26  ;;  %v3337_v31 = vpack.c.bf16 %v93_v29, %v92_v28 }
 0x248   :  { %3310 = vmatprep.subr.bf16.mxu0 %v3309_v32  ;;  %3336 = vmatprep.subr.bf16.mxu1 %v3937_v27  ;;  %v3939_v32 = vmov 0.0  }
 0x249   :  { %3276 = vmatprep.mubr.msk.f32.mxu1 %vm3938_vm1, %v3939_v32 }
 0x24b   :  { %3312 = vmatpush3.bf16.msra.mxu0 %v3311_v38  ;;  %3338 = vmatpush3.bf16.msra.mxu1 %v3337_v31  ;;  %v53_v38 = vld [vmem:[#allocation4 + $0x3] ss:$0 sm:$0xff] }
 0x24c   :  { %3314 = vmatprep.subr.bf16.mxu0 %v3313_v40  ;;  %3339 = vmatprep.subr.bf16.mxu1 %v3937_v27 }
 0x24f   :  { %3316 = vmatpush3.bf16.msra.mxu0 %v3315_v44  ;;  %v3340_v44 = vpack.c.bf16 %v95_v42, %v94_v41 }
 0x250   :  { %3318 = vmatprep.subr.bf16.mxu0 %v3317_v18 }
 0x253   :  { %3320 = vmatpush3.bf16.msra.mxu0 %v3319_v47  ;;  %v98_v47 = vld [vmem:[%s4434_s5 + $0x140] sm:$0xff] }
 0x254   :  { %3322 = vmatprep.subr.bf16.mxu0 %v3321_v35  ;;  %v99_v35 = vld [vmem:[%s4434_s5 + $0x148] sm:$0xff] }
 0x255   :  { %v3346_v52 = vpack.c.bf16 %v99_v35, %v98_v47 }
 0x257   :  { %3324 = vmatpush3.bf16.msra.mxu0 %v3323_v53 }
 0x258   :  { %3326 = vmatprep.subr.bf16.mxu0 %v3325_v54  ;;  %v100_v54 = vld [vmem:[%s4434_s5 + $0x150] sm:$0xff] }
 0x259   :  { %v3349_v56 = vpack.c.bf16 %v101_v55, %v100_v54 }
 0x25b   :  { %3328 = vmatpush3.bf16.msra.mxu0 %v3327_v57  ;;  %v56_v57 = vld [vmem:[#allocation4 + $0x6] ss:$0 sm:$0xff] }
 0x25c   :  { %3330 = vmatprep.subr.bf16.mxu0 %v3329_v60 }
 0x25f   :  { %3332 = vmatpush3.bf16.msra.mxu0 %v3331_v63 }
 0x315   :  { %v2519_v4 = vpop.f32.mrb[4].mxu0 }
 0x316   :  { %v3357_v5 = vadd.f32 %v2519_v4, %v2117_v1  ;;  %v2521_v6 = vpop.f32.mrb[5].mxu0 }
 0x317   :  { %v3358_v7 = vadd.f32 %v2521_v6, %v2121_v2  ;;  %v2523_v8 = vpop.f32.mrb[6].mxu0 }
 0x318   :  { %v2524_v9 = vpop.f32.mrb[7].mxu0  ;;  %v2526_v11 = vmax.f32 %v3357_v5, 0.0 }
 0x319   :  { %v2527_v10 = vmax.f32 %v3358_v7, 0.0  ;;  %v2843_v9 = vld [vmem:[%s4430_s1] sm:$0x3] }
 0x31b   :  { %2592 = vmatprep.mubr.f32.mxu0 %v2527_v10  ;;  %v2850_v10 = vmul.f32 -0.5, %v2843_v9 }
 0x31c   :  { %2593 = vmatmul.mubr.f32.vlgmr.msra.gmra.mrb[8].mxu0 %v2526_v11 }
 0x3ef   :  { %v3250_v12 = vpop.f32.mrb[8].mxu0 }
 0x3f0   :  { %v3251_v17 = vpop.f32.mrb[9].mxu0 }
 0x3f1   :  { %v3252_v20 = vadd.f32 %v3251_v17, %v3250_v12  ;;  %v2851_v17 = vmul.f32 %v2850_v10, %v2843_v9 }
 0x3f3   :  { %v2595_v14 = vadd.f32 %v3252_v20, %v52_v19 }
 0x3f5   :  { %v2599_v13 = vsel %vm2598_vm0, %v2595_v14, 0.0 }
 0x3f6   :  { %2600 = vadd.xlane.f32.xlu0 %v2599_v13 }
 0x483   :  { %v2601_v43 = vpop.xlane.xlu0 %2600 }
 0x484   :  { %v2603_v15 = vmul.f32 0.03125, %v2601_v43 }
 0x486   :  { %v2604_v21 = vsub.f32 %v2595_v14, %v2603_v15 }
 0x488   :  { %v2605_v22 = vmul.f32 %v2604_v21, %v2604_v21 }
 0x48a   :  { %v2606_v23 = vsel %vm2598_vm0, %v2605_v22, 0.0 }
 0x48b   :  { %2607 = vadd.xlane.f32.xlu0 %v2606_v23 }
 0x518   :  { %v2608_v33 = vpop.xlane.xlu0 %2607 }
 0x519   :  { %v2609_v34 = vmul.f32 0.03125, %v2608_v33 }
 0x51b   :  { %v2610_v36 = vadd.f32 1e-05, %v2609_v34 }
 0x51d   :  { %3874 = vrsqrt.f32 %v2610_v36 }
 0x527   :  { %v3875_v37 = vpop.eup %3874 }
 0x528   :  { %v2612_v40 = vmul.f32 %v3875_v37, %v2604_v21 }
 0x52a   :  { %v2613_v24 = vmul.f32 %v2612_v40, %v53_v38 }
 0x52c   :  { %v2614_v18 = vadd.f32 %v2613_v24, %v54_v16 }
 0x52e   :  { %3277 = vmatmul.mubr.msk.f32.vlgmr.msra.gmra.mrb[8].mxu1 %vm2615_vm2, %v2614_v18 }
 0x52f   :  { %3341 = vmatpush3.bf16.msra.mxu1 %v3340_v44  ;;  %3287 = vmatprep.mubr.msk.f32.mxu1 %vm3938_vm1, %v3939_v32 }
 0x530   :  { %3342 = vmatprep.subr.bf16.mxu1 %v3937_v27 }
 0x533   :  { %3344 = vmatpush3.bf16.msra.mxu1 %v3343_v51 }
 0x534   :  { %3345 = vmatprep.subr.bf16.mxu1 %v3937_v27 }
 0x601   :  { %v2685_v48 = vpop.f32.mrb[8].mxu1 }
 0x602   :  { %v2686_v3 = vadd.f32 %v2685_v48, %v55_v30  ;;  %v3278_v50 = vpop.f32.mrb[9].mxu1 }
 0x604   :  { %v2689_v53 = vmax.f32 %v2686_v3, 0.0 }
 0x606   :  { %3288 = vmatmul.mubr.msk.f32.vlgmr.msra.gmra.mrb[10].mxu1 %vm2615_vm2, %v2689_v53 }
 0x607   :  { %3347 = vmatpush3.bf16.msra.mxu1 %v3346_v52  ;;  %3298 = vmatprep.mubr.msk.f32.mxu1 %vm3938_vm1, %v3939_v32 }
 0x608   :  { %3348 = vmatprep.subr.bf16.mxu1 %v3937_v27 }
 0x60b   :  { %3350 = vmatpush3.bf16.msra.mxu1 %v3349_v56 }
 0x6d9   :  { %v2759_v58 = vpop.f32.mrb[10].mxu1 }
 0x6da   :  { %v2760_v59 = vadd.f32 %v2759_v58, %v56_v57  ;;  %v3289_v60 = vpop.f32.mrb[11].mxu1 }
 0x6dc   :  { %v2763_v61 = vmax.f32 %v2760_v59, 0.0 }
 0x6de   :  { %3299 = vmatmul.mubr.msk.f32.vlgmr.msra.gmra.mrb[12].mxu1 %vm2615_vm2, %v2763_v61 }
 0x7b1   :  { %v2833_v63 = vpop.f32.mrb[12].mxu1 }
 0x7b2   :  { %v2834_v0 = vadd.f32 %v2833_v63, %v57_v62  ;;  %v3300_v1 = vpop.f32.mrb[13].mxu1 }
 0x7b4   :  { %3876 = vtanh.f32 %v2834_v0 }
 0x7be   :  { %v3877_v2 = vpop.eup %3876 }
 0x7bf   :  { %v2838_v4 = vadd.f32 1.0, %v3877_v2  ;;  %2873 = vst.msk [vmem:[%s4435_s6] sm:$0x3] %vm2857_vm3, %v3877_v2 }
 0x7c1   :  { %v2839_v5 = vmul.f32 6.0, %v2838_v4 }
 0x7c3   :  { %v2840_v6 = vadd.f32 -10.0, %v2839_v5 }
 0x7c5   :  { %v2841_v7 = vmul.f32 1.442695, %v2840_v6  ;;  %v2883_v25 = vrot.slane %v2840_v6, %v4003_v49 }
 0x7c7   :  { %3878 = vpow2.f32 %v2841_v7 }
 0x7d1   :  { %v3879_v8 = vpop.eup %3878 }
 0x7d2   :  { %2845 = vrot.lane.b32.xlu1 %v3879_v8, %s3940_s22 }
 0x7d6   :  { %2853 = vrot.lane.b32.xlu1 %v2840_v6, %s3940_s22 }
 0x844   :  { %v2846_v11 = vpop.permute.xlu1 %2845 }
 0x845   :  { %v2848_v12 = vmul.f32 %v2846_v11, %v2843_v9 }
 0x847   :  { %v2849_v19 = vadd.f32 %v2848_v12, %v2834_v0 }
 0x848   :  { %v2854_v20 = vpop.permute.xlu1 %2853 }
 0x849   :  { %3880 = vtanh.f32 %v2849_v19  ;;  %v2856_v14 = vsub.f32 %v2851_v17, %v2854_v20 }
 0x84b   :  { %v2858_v13 = vsel %vm2857_vm3, %v2856_v14, 0.0 }
 0x84c   :  { %2859 = vadd.xlane.f32.xlu0 %v2858_v13 }
 0x853   :  { %v3881_v43 = vpop.eup %3880 }
 0x854   :  { %2874 = vst.msk [vmem:[%s4435_s6 + $0x2] sm:$0x3] %vm2857_vm3, %v3881_v43  ;;  %v2863_v15 = vmul.f32 %v3881_v43, %v3881_v43 }
 0x856   :  { %v2864_v21 = vsub.f32 1.0, %v2863_v15 }
 0x858   :  { %v2865_v22 = vmax.f32 %v2864_v21, 0.0 }
 0x85a   :  { %v2866_v23 = vadd.f32 1e-06, %v2865_v22 }
 0x85c   :  { %3882 = vlog2.f32 %v2866_v23 }
 0x862   :  { %2884 = vrot.lane.b32.xlu0 %v2883_v25, %s3940_s22 }
 0x866   :  { %v3883_v39 = vpop.eup %3882 }
 0x867   :  { %v2868_v26 = vmul.f32 0.6931472, %v3883_v39 }
 0x869   :  { %v2869_v27 = vsel %vm2857_vm3, %v2868_v26, 0.0 }
 0x86a   :  { %2870 = vadd.xlane.f32.xlu1 %v2869_v27 }
 0x8d9   :  { %v2860_v28 = vpop.xlane.xlu0 %2859 }
 0x8da   :  { %v3217_v31 = vadd.f32 -3.675754, %v2860_v28 }
 0x8dd   :  { %v2885_v29 = vpop.permute.xlu0 %2884 }
 0x8de   :  { %2887 = vst.msk [vmem:[%s4435_s6 + $0x6] sm:$0x3] %vm2857_vm3, %v2885_v29 }
 0x8f7   :  { %v2871_v32 = vpop.xlane.xlu1 %2870 }
 0x8f8   :  { %v2872_v33 = vsub.f32 %v3217_v31, %v2871_v32 }
 0x8fa   :  { %2876 = vst.msk [vmem:[%s4435_s6 + $0x4] sm:$0x3] %vm2875_vm4, %v2872_v33 }
 0x8fb   :  { %2892 = vsyncpa [#allocation3], 1 }
 0x8fc   :  { %2893 = vsyncpa [#allocation5], 1 }

</bundles_post_ra>
